<compile_context>
chip_gen: v5e
topology: v5e:2x2
jax: 0.10.0
libtpu: 0.0.40
codegen_flags: <defaults>
</compile_context>

<pallas_src>
import functools
import math

import jax
import jax.numpy as jnp
import numpy as np
from jax.experimental import pallas as pl
from jax.experimental.pallas import tpu as pltpu

_EPS = 1e-6
_NEG_INF = -1e9


def _layer_norm(x, a, b, eps=_EPS):
    """Spec LayerNorm: a * (x - mean) / (std + eps) + b, torch.std (unbiased, N-1)."""
    d = x.shape[-1]
    mean = jnp.mean(x, axis=-1, keepdims=True)
    centered = x - mean
    var = jnp.sum(centered * centered, axis=-1, keepdims=True) / (d - 1)
    std = jnp.sqrt(var)
    return a * centered / (std + eps) + b


def _encoder_layer_kernel(
    x_ref, mask_ref,
    ln1_a_ref, ln1_b_ref,
    wq_ref, bq_ref, wk_ref, bk_ref, wv_ref, bv_ref,
    wo_ref, bo_ref,
    ln2_a_ref, ln2_b_ref,
    w1_ref, b1_ref, w2_ref, b2_ref,
    o_ref,
    *, num_heads,
):
    # One batch element per grid step; batch dim is squeezed out of the refs.
    x = x_ref[...].astype(jnp.float32)          # (S, D)
    mask = mask_ref[...]                        # (1, S): 1.0 = keep, 0.0 = masked key

    # ---------------- sublayer 0: x + self_attn(norm1(x)) -------------------
    y = _layer_norm(x, ln1_a_ref[...], ln1_b_ref[...])

    d_k = wq_ref.shape[-1]
    scale = 1.0 / math.sqrt(d_k)

    attn_out = jnp.zeros_like(x)                # (S, D) accumulator over heads
    for hh in range(num_heads):                 # static unroll; no lane slicing needed
        q_h = jnp.dot(y, wq_ref[hh], preferred_element_type=jnp.float32) + bq_ref[hh]
        k_h = jnp.dot(y, wk_ref[hh], preferred_element_type=jnp.float32) + bk_ref[hh]
        v_h = jnp.dot(y, wv_ref[hh], preferred_element_type=jnp.float32) + bv_ref[hh]

        # scores = q @ k^T / sqrt(d_k); contraction on d avoids an explicit transpose.
        scores = jnp.einsum("qd,kd->qk", q_h, k_h,
                            preferred_element_type=jnp.float32) * scale      # (S, S)
        scores = jnp.where(mask == 0.0, _NEG_INF, scores)                    # (1,S)->(S,S)

        m = jnp.max(scores, axis=-1, keepdims=True)
        p = jnp.exp(scores - m)
        p = p / jnp.sum(p, axis=-1, keepdims=True)                           # softmax

        ctx_h = jnp.dot(p, v_h, preferred_element_type=jnp.float32)          # (S, d_k)
        # Output projection: head slice of W_o rows; heads sum into the full slab.
        attn_out = attn_out + jnp.dot(ctx_h, wo_ref[hh],
                                      preferred_element_type=jnp.float32)    # (S, D)

    attn_out = attn_out + bo_ref[...]
    x = x + attn_out                            # residual (dropout = identity)

    # ---------------- sublayer 1: x + feed_forward(norm2(x)) ----------------
    y = _layer_norm(x, ln2_a_ref[...], ln2_b_ref[...])
    hdn = jnp.dot(y, w1_ref[...], preferred_element_type=jnp.float32) + b1_ref[...]
    hdn = jnp.maximum(hdn, 0.0)                 # ReLU
    ff = jnp.dot(hdn, w2_ref[...], preferred_element_type=jnp.float32) + b2_ref[...]
    x = x + ff                                  # residual (dropout = identity)

    o_ref[...] = x.astype(o_ref.dtype)


def encoder_layer_forward(x, mask, params):
    """x: (B, S, D) float32; mask: (B, 1, S) in {0, 1}.  Returns (B, S, D)."""
    B, S, D = x.shape
    h = params["num_heads"]
    d_k = D // h
    F = params["w1"].shape[-1]

    # --- parameter layout prep (plain JAX, one-time): split projections per head so
    # the kernel only indexes leading axes and never reshapes / lane-slices. ---
    def split_cols(w):   # (D, D) -> (h, D, d_k)   (column blocks of W)
        return jnp.transpose(w.reshape(D, h, d_k), (1, 0, 2))

    def split_bias(b):   # (D,) -> (h, 1, d_k)
        return b.reshape(h, 1, d_k)

    wq = split_cols(params["wq"]); bq = split_bias(params["bq"])
    wk = split_cols(params["wk"]); bk = split_bias(params["bk"])
    wv = split_cols(params["wv"]); bv = split_bias(params["bv"])
    wo = params["wo"].reshape(h, d_k, D)         # row blocks of W_o
    bo = params["bo"].reshape(1, D)

    ln1_a = params["ln1_a"].reshape(1, D); ln1_b = params["ln1_b"].reshape(1, D)
    ln2_a = params["ln2_a"].reshape(1, D); ln2_b = params["ln2_b"].reshape(1, D)
    w1 = params["w1"]; b1 = params["b1"].reshape(1, F)
    w2 = params["w2"]; b2 = params["b2"].reshape(1, D)

    mask = mask.astype(jnp.float32)

    def full(shape):     # whole-array block, constant across the grid
        return pl.BlockSpec(shape, lambda b, _n=len(shape): (0,) * _n)

    kernel = functools.partial(_encoder_layer_kernel, num_heads=h)

    return pl.pallas_call(
        kernel,
        out_shape=jax.ShapeDtypeStruct((B, S, D), x.dtype),
        grid=(B,),
        in_specs=[
            pl.BlockSpec((None, S, D), lambda b: (b, 0, 0)),   # x  (batch squeezed)
            pl.BlockSpec((None, 1, S), lambda b: (b, 0, 0)),   # mask
            full((1, D)), full((1, D)),                        # layernorm 1 a, b
            full((h, D, d_k)), full((h, 1, d_k)),              # W_q, b_q (per head)
            full((h, D, d_k)), full((h, 1, d_k)),              # W_k, b_k
            full((h, D, d_k)), full((h, 1, d_k)),              # W_v, b_v
            full((h, d_k, D)), full((1, D)),                   # W_o, b_o
            full((1, D)), full((1, D)),                        # layernorm 2 a, b
            full((D, F)), full((1, F)),                        # FFN W1, b1
            full((F, D)), full((1, D)),                        # FFN W2, b2
        ],
        out_specs=pl.BlockSpec((None, S, D), lambda b: (b, 0, 0)),
        compiler_params=pltpu.CompilerParams(
            dimension_semantics=("parallel",),
            vmem_limit_bytes=32 * 1024 * 1024,
        ),
    )(x, mask, ln1_a, ln1_b, wq, bq, wk, bk, wv, bv, wo, bo,
      ln2_a, ln2_b, w1, b1, w2, b2)


# ----------------------------- pure-JAX reference -----------------------------
def encoder_layer_reference(x, mask, params):
    B, S, D = x.shape
    h = params["num_heads"]
    d_k = D // h
    hp = jax.lax.Precision.HIGHEST
    mm = functools.partial(jnp.matmul, precision=hp)

    def ln(t, a, b):
        mean = t.mean(-1, keepdims=True)
        var = jnp.sum((t - mean) ** 2, axis=-1, keepdims=True) / (D - 1)
        return a * (t - mean) / (jnp.sqrt(var) + _EPS) + b

    # sublayer 0
    y = ln(x, params["ln1_a"], params["ln1_b"])
    q = mm(y, params["wq"]) + params["bq"]
    k = mm(y, params["wk"]) + params["bk"]
    v = mm(y, params["wv"]) + params["bv"]

    def split(t):  # (B,S,D) -> (B,h,S,d_k)
        return t.reshape(B, S, h, d_k).transpose(0, 2, 1, 3)

    qh, kh, vh = split(q), split(k), split(v)
    scores = jnp.einsum("bhqd,bhkd->bhqk", qh, kh, precision=hp) / math.sqrt(d_k)
    scores = jnp.where(mask[:, None, :, :] == 0.0, _NEG_INF, scores)
    p = jax.nn.softmax(scores, axis=-1)
    ctx = jnp.einsum("bhqk,bhkd->bhqd", p, vh, precision=hp)
    ctx = ctx.transpose(0, 2, 1, 3).reshape(B, S, D)
    attn = mm(ctx, params["wo"]) + params["bo"]
    x = x + attn

    # sublayer 1
    y = ln(x, params["ln2_a"], params["ln2_b"])
    ff = mm(jax.nn.relu(mm(y, params["w1"]) + params["b1"]), params["w2"]) + params["b2"]
    return x + ff


if __name__ == "__main__":
    # Small but TPU-friendly shapes: lane-dense d_model (multiple of 128).
    B, S, D, H, F = 2, 16, 128, 4, 256

    key = jax.random.PRNGKey(0)
    ks = jax.random.split(key, 20)
    scale = 0.05

    def w(k, shape):
        return scale * jax.random.normal(k, shape, dtype=jnp.float32)

    params = {
        "num_heads": H,
        "ln1_a": 1.0 + 0.1 * jax.random.normal(ks[0], (D,), dtype=jnp.float32),
        "ln1_b": 0.1 * jax.random.normal(ks[1], (D,), dtype=jnp.float32),
        "wq": w(ks[2], (D, D)), "bq": w(ks[3], (D,)),
        "wk": w(ks[4], (D, D)), "bk": w(ks[5], (D,)),
        "wv": w(ks[6], (D, D)), "bv": w(ks[7], (D,)),
        "wo": w(ks[8], (D, D)), "bo": w(ks[9], (D,)),
        "ln2_a": 1.0 + 0.1 * jax.random.normal(ks[10], (D,), dtype=jnp.float32),
        "ln2_b": 0.1 * jax.random.normal(ks[11], (D,), dtype=jnp.float32),
        "w1": w(ks[12], (D, F)), "b1": w(ks[13], (F,)),
        "w2": w(ks[14], (F, D)), "b2": w(ks[15], (D,)),
    }

    x = jax.random.normal(ks[16], (B, S, D), dtype=jnp.float32)
    # Key-padding mask (B, 1, S): first element fully valid, second has 6 padded keys.
    lengths = jnp.array([S, S - 6])
    mask = (jnp.arange(S)[None, :] < lengths[:, None]).astype(jnp.float32)[:, None, :]

    out = encoder_layer_forward(x, mask, params)
    out = jax.block_until_ready(out)

    ref = encoder_layer_reference(x, mask, params)
    np.testing.assert_allclose(np.asarray(out), np.asarray(ref), rtol=2e-3, atol=2e-3)

    print("KERNEL_OK")
</pallas_src>

<mosaic_0001>
module attributes {stable_mosaic.version = 11 : i64} {
  func.func @_encoder_layer_kernel(%arg0: i32, %arg1: memref<1x16x128xf32, #tpu.memory_space<vmem>>, %arg2: memref<1x1x16xf32, #tpu.memory_space<vmem>>, %arg3: memref<1x128xf32, #tpu.memory_space<vmem>>, %arg4: memref<1x128xf32, #tpu.memory_space<vmem>>, %arg5: memref<4x128x32xf32, #tpu.memory_space<vmem>>, %arg6: memref<4x1x32xf32, #tpu.memory_space<vmem>>, %arg7: memref<4x128x32xf32, #tpu.memory_space<vmem>>, %arg8: memref<4x1x32xf32, #tpu.memory_space<vmem>>, %arg9: memref<4x128x32xf32, #tpu.memory_space<vmem>>, %arg10: memref<4x1x32xf32, #tpu.memory_space<vmem>>, %arg11: memref<4x32x128xf32, #tpu.memory_space<vmem>>, %arg12: memref<1x128xf32, #tpu.memory_space<vmem>>, %arg13: memref<1x128xf32, #tpu.memory_space<vmem>>, %arg14: memref<1x128xf32, #tpu.memory_space<vmem>>, %arg15: memref<128x256xf32, #tpu.memory_space<vmem>>, %arg16: memref<1x256xf32, #tpu.memory_space<vmem>>, %arg17: memref<256x128xf32, #tpu.memory_space<vmem>>, %arg18: memref<1x128xf32, #tpu.memory_space<vmem>>, %arg19: memref<1x16x128xf32, #tpu.memory_space<vmem>>) attributes {dimension_semantics = [#tpu.dimension_semantics<parallel>], iteration_bounds = array<i64: 2>, scalar_prefetch = 0 : i64, scratch_operands = 0 : i64, tpu.core_type = #tpu.core_type<tc>, window_params = [{transform_indices = @transform_0, window_bounds = array<i64: 1, 16, 128>}, {transform_indices = @transform_1, window_bounds = array<i64: 1, 1, 16>}, {pipeline_mode = #tpu.pipeline_mode<synchronous>, transform_indices = @transform_2, window_bounds = array<i64: 1, 128>}, {pipeline_mode = #tpu.pipeline_mode<synchronous>, transform_indices = @transform_3, window_bounds = array<i64: 1, 128>}, {pipeline_mode = #tpu.pipeline_mode<synchronous>, transform_indices = @transform_4, window_bounds = array<i64: 4, 128, 32>}, {pipeline_mode = #tpu.pipeline_mode<synchronous>, transform_indices = @transform_5, window_bounds = array<i64: 4, 1, 32>}, {pipeline_mode = #tpu.pipeline_mode<synchronous>, transform_indices = @transform_6, window_bounds = array<i64: 4, 128, 32>}, {pipeline_mode = #tpu.pipeline_mode<synchronous>, transform_indices = @transform_7, window_bounds = array<i64: 4, 1, 32>}, {pipeline_mode = #tpu.pipeline_mode<synchronous>, transform_indices = @transform_8, window_bounds = array<i64: 4, 128, 32>}, {pipeline_mode = #tpu.pipeline_mode<synchronous>, transform_indices = @transform_9, window_bounds = array<i64: 4, 1, 32>}, {pipeline_mode = #tpu.pipeline_mode<synchronous>, transform_indices = @transform_10, window_bounds = array<i64: 4, 32, 128>}, {pipeline_mode = #tpu.pipeline_mode<synchronous>, transform_indices = @transform_11, window_bounds = array<i64: 1, 128>}, {pipeline_mode = #tpu.pipeline_mode<synchronous>, transform_indices = @transform_12, window_bounds = array<i64: 1, 128>}, {pipeline_mode = #tpu.pipeline_mode<synchronous>, transform_indices = @transform_13, window_bounds = array<i64: 1, 128>}, {pipeline_mode = #tpu.pipeline_mode<synchronous>, transform_indices = @transform_14, window_bounds = array<i64: 128, 256>}, {pipeline_mode = #tpu.pipeline_mode<synchronous>, transform_indices = @transform_15, window_bounds = array<i64: 1, 256>}, {pipeline_mode = #tpu.pipeline_mode<synchronous>, transform_indices = @transform_16, window_bounds = array<i64: 256, 128>}, {pipeline_mode = #tpu.pipeline_mode<synchronous>, transform_indices = @transform_17, window_bounds = array<i64: 1, 128>}, {transform_indices = @transform_18, window_bounds = array<i64: 1, 16, 128>}]} {
    %c0 = arith.constant 0 : index
    %c0_0 = arith.constant 0 : index
    %c0_1 = arith.constant 0 : index
    %0 = vector.load %arg1[%c0, %c0_0, %c0_1] : memref<1x16x128xf32, #tpu.memory_space<vmem>>, vector<1x16x128xf32>
    %1 = vector.shape_cast %0 : vector<1x16x128xf32> to vector<16x128xf32>
    %c0_2 = arith.constant 0 : index
    %c0_3 = arith.constant 0 : index
    %c0_4 = arith.constant 0 : index
    %2 = vector.load %arg2[%c0_2, %c0_3, %c0_4] : memref<1x1x16xf32, #tpu.memory_space<vmem>>, vector<1x1x16xf32>
    %3 = vector.shape_cast %2 : vector<1x1x16xf32> to vector<1x16xf32>
    %c0_5 = arith.constant 0 : index
    %c0_6 = arith.constant 0 : index
    %4 = vector.load %arg3[%c0_5, %c0_6] : memref<1x128xf32, #tpu.memory_space<vmem>>, vector<1x128xf32>
    %c0_7 = arith.constant 0 : index
    %c0_8 = arith.constant 0 : index
    %5 = vector.load %arg4[%c0_7, %c0_8] : memref<1x128xf32, #tpu.memory_space<vmem>>, vector<1x128xf32>
    %cst = arith.constant dense<0.000000e+00> : vector<16xf32>
    %6 = vector.multi_reduction <add>, %1, %cst [1] : vector<16x128xf32> to vector<16xf32>
    %7 = vector.shape_cast %6 : vector<16xf32> to vector<16x1xf32>
    %cst_9 = arith.constant 1.280000e+02 : f32
    %8 = vector.broadcast %cst_9 : f32 to vector<16x1xf32>
    %9 = arith.divf %7, %8 : vector<16x1xf32>
    %10 = vector.broadcast %9 : vector<16x1xf32> to vector<16x128xf32>
    %11 = arith.subf %1, %10 : vector<16x128xf32>
    %12 = arith.mulf %11, %11 : vector<16x128xf32>
    %cst_10 = arith.constant dense<0.000000e+00> : vector<16xf32>
    %13 = vector.multi_reduction <add>, %12, %cst_10 [1] : vector<16x128xf32> to vector<16xf32>
    %14 = vector.shape_cast %13 : vector<16xf32> to vector<16x1xf32>
    %cst_11 = arith.constant 1.270000e+02 : f32
    %15 = vector.broadcast %cst_11 : f32 to vector<16x1xf32>
    %16 = arith.divf %14, %15 : vector<16x1xf32>
    %17 = math.sqrt %16 : vector<16x1xf32>
    %18 = vector.broadcast %4 : vector<1x128xf32> to vector<16x128xf32>
    %19 = arith.mulf %18, %11 : vector<16x128xf32>
    %cst_12 = arith.constant 9.99999997E-7 : f32
    %20 = vector.broadcast %cst_12 : f32 to vector<16x1xf32>
    %21 = arith.addf %17, %20 : vector<16x1xf32>
    %22 = vector.broadcast %21 : vector<16x1xf32> to vector<16x128xf32>
    %23 = arith.divf %19, %22 : vector<16x128xf32>
    %24 = vector.broadcast %5 : vector<1x128xf32> to vector<16x128xf32>
    %25 = arith.addf %23, %24 : vector<16x128xf32>
    %cst_13 = arith.constant 0.000000e+00 : f32
    %26 = vector.broadcast %cst_13 : f32 to vector<16x128xf32>
    %c0_14 = arith.constant 0 : index
    %c0_15 = arith.constant 0 : index
    %c0_16 = arith.constant 0 : index
    %27 = vector.load %arg5[%c0_14, %c0_15, %c0_16] : memref<4x128x32xf32, #tpu.memory_space<vmem>>, vector<1x128x32xf32>
    %28 = vector.shape_cast %27 : vector<1x128x32xf32> to vector<128x32xf32>
    %cst_17 = arith.constant dense<0.000000e+00> : vector<16x32xf32>
    %29 = tpu.matmul %25, %28, %cst_17 {dimension_numbers = #tpu.dot_dimension_numbers<[1], [0], [0], [1], [0, 0, 1, 1], [], []>} : vector<16x128xf32>, vector<128x32xf32>, vector<16x32xf32> -> vector<16x32xf32>
    %c0_18 = arith.constant 0 : index
    %c0_19 = arith.constant 0 : index
    %c0_20 = arith.constant 0 : index
    %30 = vector.load %arg6[%c0_18, %c0_19, %c0_20] : memref<4x1x32xf32, #tpu.memory_space<vmem>>, vector<1x1x32xf32>
    %31 = vector.shape_cast %30 : vector<1x1x32xf32> to vector<1x32xf32>
    %32 = vector.broadcast %31 : vector<1x32xf32> to vector<16x32xf32>
    %33 = arith.addf %29, %32 : vector<16x32xf32>
    %c0_21 = arith.constant 0 : index
    %c0_22 = arith.constant 0 : index
    %c0_23 = arith.constant 0 : index
    %34 = vector.load %arg7[%c0_21, %c0_22, %c0_23] : memref<4x128x32xf32, #tpu.memory_space<vmem>>, vector<1x128x32xf32>
    %35 = vector.shape_cast %34 : vector<1x128x32xf32> to vector<128x32xf32>
    %cst_24 = arith.constant dense<0.000000e+00> : vector<16x32xf32>
    %36 = tpu.matmul %25, %35, %cst_24 {dimension_numbers = #tpu.dot_dimension_numbers<[1], [0], [0], [1], [0, 0, 1, 1], [], []>} : vector<16x128xf32>, vector<128x32xf32>, vector<16x32xf32> -> vector<16x32xf32>
    %c0_25 = arith.constant 0 : index
    %c0_26 = arith.constant 0 : index
    %c0_27 = arith.constant 0 : index
    %37 = vector.load %arg8[%c0_25, %c0_26, %c0_27] : memref<4x1x32xf32, #tpu.memory_space<vmem>>, vector<1x1x32xf32>
    %38 = vector.shape_cast %37 : vector<1x1x32xf32> to vector<1x32xf32>
    %39 = vector.broadcast %38 : vector<1x32xf32> to vector<16x32xf32>
    %40 = arith.addf %36, %39 : vector<16x32xf32>
    %c0_28 = arith.constant 0 : index
    %c0_29 = arith.constant 0 : index
    %c0_30 = arith.constant 0 : index
    %41 = vector.load %arg9[%c0_28, %c0_29, %c0_30] : memref<4x128x32xf32, #tpu.memory_space<vmem>>, vector<1x128x32xf32>
    %42 = vector.shape_cast %41 : vector<1x128x32xf32> to vector<128x32xf32>
    %cst_31 = arith.constant dense<0.000000e+00> : vector<16x32xf32>
    %43 = tpu.matmul %25, %42, %cst_31 {dimension_numbers = #tpu.dot_dimension_numbers<[1], [0], [0], [1], [0, 0, 1, 1], [], []>} : vector<16x128xf32>, vector<128x32xf32>, vector<16x32xf32> -> vector<16x32xf32>
    %c0_32 = arith.constant 0 : index
    %c0_33 = arith.constant 0 : index
    %c0_34 = arith.constant 0 : index
    %44 = vector.load %arg10[%c0_32, %c0_33, %c0_34] : memref<4x1x32xf32, #tpu.memory_space<vmem>>, vector<1x1x32xf32>
    %45 = vector.shape_cast %44 : vector<1x1x32xf32> to vector<1x32xf32>
    %46 = vector.broadcast %45 : vector<1x32xf32> to vector<16x32xf32>
    %47 = arith.addf %43, %46 : vector<16x32xf32>
    "tpu.trace_start"() <{level = 10 : i32, message = "qd,kd->qk"}> : () -> ()
    %cst_35 = arith.constant dense<0.000000e+00> : vector<16x16xf32>
    %48 = tpu.matmul %33, %40, %cst_35 {dimension_numbers = #tpu.dot_dimension_numbers<[1], [1], [0], [0], [0, 0, 1, 0], [], []>} : vector<16x32xf32>, vector<16x32xf32>, vector<16x16xf32> -> vector<16x16xf32>
    "tpu.trace_stop"() : () -> ()
    %cst_36 = arith.constant 0.176776692 : f32
    %49 = vector.broadcast %cst_36 : f32 to vector<16x16xf32>
    %50 = arith.mulf %48, %49 : vector<16x16xf32>
    %cst_37 = arith.constant 0.000000e+00 : f32
    %51 = vector.broadcast %cst_37 : f32 to vector<1x16xf32>
    %52 = arith.cmpf oeq, %3, %51 : vector<1x16xf32>
    %cst_38 = arith.constant -1.000000e+09 : f32
    %53 = vector.shape_cast %52 : vector<1x16xi1> to vector<1x16xi1>
    %54 = vector.broadcast %53 : vector<1x16xi1> to vector<16x16xi1>
    %55 = vector.broadcast %cst_38 : f32 to vector<16x16xf32>
    %56 = arith.select %54, %55, %50 : vector<16x16xi1>, vector<16x16xf32>
    %cst_39 = arith.constant dense<0xFF800000> : vector<16xf32>
    %57 = vector.multi_reduction <maximumf>, %56, %cst_39 [1] : vector<16x16xf32> to vector<16xf32>
    %58 = vector.shape_cast %57 : vector<16xf32> to vector<16x1xf32>
    %59 = vector.broadcast %58 : vector<16x1xf32> to vector<16x16xf32>
    %60 = arith.subf %56, %59 : vector<16x16xf32>
    %61 = math.exp %60 : vector<16x16xf32>
    %cst_40 = arith.constant dense<0.000000e+00> : vector<16xf32>
    %62 = vector.multi_reduction <add>, %61, %cst_40 [1] : vector<16x16xf32> to vector<16xf32>
    %63 = vector.shape_cast %62 : vector<16xf32> to vector<16x1xf32>
    %64 = vector.broadcast %63 : vector<16x1xf32> to vector<16x16xf32>
    %65 = arith.divf %61, %64 : vector<16x16xf32>
    %cst_41 = arith.constant dense<0.000000e+00> : vector<16x32xf32>
    %66 = tpu.matmul %65, %47, %cst_41 {dimension_numbers = #tpu.dot_dimension_numbers<[1], [0], [0], [1], [0, 0, 1, 1], [], []>} : vector<16x16xf32>, vector<16x32xf32>, vector<16x32xf32> -> vector<16x32xf32>
    %c0_42 = arith.constant 0 : index
    %c0_43 = arith.constant 0 : index
    %c0_44 = arith.constant 0 : index
    %67 = vector.load %arg11[%c0_42, %c0_43, %c0_44] : memref<4x32x128xf32, #tpu.memory_space<vmem>>, vector<1x32x128xf32>
    %68 = vector.shape_cast %67 : vector<1x32x128xf32> to vector<32x128xf32>
    %cst_45 = arith.constant dense<0.000000e+00> : vector<16x128xf32>
    %69 = tpu.matmul %66, %68, %cst_45 {dimension_numbers = #tpu.dot_dimension_numbers<[1], [0], [0], [1], [0, 0, 1, 1], [], []>} : vector<16x32xf32>, vector<32x128xf32>, vector<16x128xf32> -> vector<16x128xf32>
    %70 = arith.addf %26, %69 : vector<16x128xf32>
    %c1 = arith.constant 1 : index
    %c0_46 = arith.constant 0 : index
    %c0_47 = arith.constant 0 : index
    %71 = vector.load %arg5[%c1, %c0_46, %c0_47] : memref<4x128x32xf32, #tpu.memory_space<vmem>>, vector<1x128x32xf32>
    %72 = vector.shape_cast %71 : vector<1x128x32xf32> to vector<128x32xf32>
    %cst_48 = arith.constant dense<0.000000e+00> : vector<16x32xf32>
    %73 = tpu.matmul %25, %72, %cst_48 {dimension_numbers = #tpu.dot_dimension_numbers<[1], [0], [0], [1], [0, 0, 1, 1], [], []>} : vector<16x128xf32>, vector<128x32xf32>, vector<16x32xf32> -> vector<16x32xf32>
    %c1_49 = arith.constant 1 : index
    %c0_50 = arith.constant 0 : index
    %c0_51 = arith.constant 0 : index
    %74 = vector.load %arg6[%c1_49, %c0_50, %c0_51] : memref<4x1x32xf32, #tpu.memory_space<vmem>>, vector<1x1x32xf32>
    %75 = vector.shape_cast %74 : vector<1x1x32xf32> to vector<1x32xf32>
    %76 = vector.broadcast %75 : vector<1x32xf32> to vector<16x32xf32>
    %77 = arith.addf %73, %76 : vector<16x32xf32>
    %c1_52 = arith.constant 1 : index
    %c0_53 = arith.constant 0 : index
    %c0_54 = arith.constant 0 : index
    %78 = vector.load %arg7[%c1_52, %c0_53, %c0_54] : memref<4x128x32xf32, #tpu.memory_space<vmem>>, vector<1x128x32xf32>
    %79 = vector.shape_cast %78 : vector<1x128x32xf32> to vector<128x32xf32>
    %cst_55 = arith.constant dense<0.000000e+00> : vector<16x32xf32>
    %80 = tpu.matmul %25, %79, %cst_55 {dimension_numbers = #tpu.dot_dimension_numbers<[1], [0], [0], [1], [0, 0, 1, 1], [], []>} : vector<16x128xf32>, vector<128x32xf32>, vector<16x32xf32> -> vector<16x32xf32>
    %c1_56 = arith.constant 1 : index
    %c0_57 = arith.constant 0 : index
    %c0_58 = arith.constant 0 : index
    %81 = vector.load %arg8[%c1_56, %c0_57, %c0_58] : memref<4x1x32xf32, #tpu.memory_space<vmem>>, vector<1x1x32xf32>
    %82 = vector.shape_cast %81 : vector<1x1x32xf32> to vector<1x32xf32>
    %83 = vector.broadcast %82 : vector<1x32xf32> to vector<16x32xf32>
    %84 = arith.addf %80, %83 : vector<16x32xf32>
    %c1_59 = arith.constant 1 : index
    %c0_60 = arith.constant 0 : index
    %c0_61 = arith.constant 0 : index
    %85 = vector.load %arg9[%c1_59, %c0_60, %c0_61] : memref<4x128x32xf32, #tpu.memory_space<vmem>>, vector<1x128x32xf32>
    %86 = vector.shape_cast %85 : vector<1x128x32xf32> to vector<128x32xf32>
    %cst_62 = arith.constant dense<0.000000e+00> : vector<16x32xf32>
    %87 = tpu.matmul %25, %86, %cst_62 {dimension_numbers = #tpu.dot_dimension_numbers<[1], [0], [0], [1], [0, 0, 1, 1], [], []>} : vector<16x128xf32>, vector<128x32xf32>, vector<16x32xf32> -> vector<16x32xf32>
    %c1_63 = arith.constant 1 : index
    %c0_64 = arith.constant 0 : index
    %c0_65 = arith.constant 0 : index
    %88 = vector.load %arg10[%c1_63, %c0_64, %c0_65] : memref<4x1x32xf32, #tpu.memory_space<vmem>>, vector<1x1x32xf32>
    %89 = vector.shape_cast %88 : vector<1x1x32xf32> to vector<1x32xf32>
    %90 = vector.broadcast %89 : vector<1x32xf32> to vector<16x32xf32>
    %91 = arith.addf %87, %90 : vector<16x32xf32>
    "tpu.trace_start"() <{level = 10 : i32, message = "qd,kd->qk"}> : () -> ()
    %cst_66 = arith.constant dense<0.000000e+00> : vector<16x16xf32>
    %92 = tpu.matmul %77, %84, %cst_66 {dimension_numbers = #tpu.dot_dimension_numbers<[1], [1], [0], [0], [0, 0, 1, 0], [], []>} : vector<16x32xf32>, vector<16x32xf32>, vector<16x16xf32> -> vector<16x16xf32>
    "tpu.trace_stop"() : () -> ()
    %cst_67 = arith.constant 0.176776692 : f32
    %93 = vector.broadcast %cst_67 : f32 to vector<16x16xf32>
    %94 = arith.mulf %92, %93 : vector<16x16xf32>
    %cst_68 = arith.constant 0.000000e+00 : f32
    %95 = vector.broadcast %cst_68 : f32 to vector<1x16xf32>
    %96 = arith.cmpf oeq, %3, %95 : vector<1x16xf32>
    %cst_69 = arith.constant -1.000000e+09 : f32
    %97 = vector.shape_cast %96 : vector<1x16xi1> to vector<1x16xi1>
    %98 = vector.broadcast %97 : vector<1x16xi1> to vector<16x16xi1>
    %99 = vector.broadcast %cst_69 : f32 to vector<16x16xf32>
    %100 = arith.select %98, %99, %94 : vector<16x16xi1>, vector<16x16xf32>
    %cst_70 = arith.constant dense<0xFF800000> : vector<16xf32>
    %101 = vector.multi_reduction <maximumf>, %100, %cst_70 [1] : vector<16x16xf32> to vector<16xf32>
    %102 = vector.shape_cast %101 : vector<16xf32> to vector<16x1xf32>
    %103 = vector.broadcast %102 : vector<16x1xf32> to vector<16x16xf32>
    %104 = arith.subf %100, %103 : vector<16x16xf32>
    %105 = math.exp %104 : vector<16x16xf32>
    %cst_71 = arith.constant dense<0.000000e+00> : vector<16xf32>
    %106 = vector.multi_reduction <add>, %105, %cst_71 [1] : vector<16x16xf32> to vector<16xf32>
    %107 = vector.shape_cast %106 : vector<16xf32> to vector<16x1xf32>
    %108 = vector.broadcast %107 : vector<16x1xf32> to vector<16x16xf32>
    %109 = arith.divf %105, %108 : vector<16x16xf32>
    %cst_72 = arith.constant dense<0.000000e+00> : vector<16x32xf32>
    %110 = tpu.matmul %109, %91, %cst_72 {dimension_numbers = #tpu.dot_dimension_numbers<[1], [0], [0], [1], [0, 0, 1, 1], [], []>} : vector<16x16xf32>, vector<16x32xf32>, vector<16x32xf32> -> vector<16x32xf32>
    %c1_73 = arith.constant 1 : index
    %c0_74 = arith.constant 0 : index
    %c0_75 = arith.constant 0 : index
    %111 = vector.load %arg11[%c1_73, %c0_74, %c0_75] : memref<4x32x128xf32, #tpu.memory_space<vmem>>, vector<1x32x128xf32>
    %112 = vector.shape_cast %111 : vector<1x32x128xf32> to vector<32x128xf32>
    %cst_76 = arith.constant dense<0.000000e+00> : vector<16x128xf32>
    %113 = tpu.matmul %110, %112, %cst_76 {dimension_numbers = #tpu.dot_dimension_numbers<[1], [0], [0], [1], [0, 0, 1, 1], [], []>} : vector<16x32xf32>, vector<32x128xf32>, vector<16x128xf32> -> vector<16x128xf32>
    %114 = arith.addf %70, %113 : vector<16x128xf32>
    %c2 = arith.constant 2 : index
    %c0_77 = arith.constant 0 : index
    %c0_78 = arith.constant 0 : index
    %115 = vector.load %arg5[%c2, %c0_77, %c0_78] : memref<4x128x32xf32, #tpu.memory_space<vmem>>, vector<1x128x32xf32>
    %116 = vector.shape_cast %115 : vector<1x128x32xf32> to vector<128x32xf32>
    %cst_79 = arith.constant dense<0.000000e+00> : vector<16x32xf32>
    %117 = tpu.matmul %25, %116, %cst_79 {dimension_numbers = #tpu.dot_dimension_numbers<[1], [0], [0], [1], [0, 0, 1, 1], [], []>} : vector<16x128xf32>, vector<128x32xf32>, vector<16x32xf32> -> vector<16x32xf32>
    %c2_80 = arith.constant 2 : index
    %c0_81 = arith.constant 0 : index
    %c0_82 = arith.constant 0 : index
    %118 = vector.load %arg6[%c2_80, %c0_81, %c0_82] : memref<4x1x32xf32, #tpu.memory_space<vmem>>, vector<1x1x32xf32>
    %119 = vector.shape_cast %118 : vector<1x1x32xf32> to vector<1x32xf32>
    %120 = vector.broadcast %119 : vector<1x32xf32> to vector<16x32xf32>
    %121 = arith.addf %117, %120 : vector<16x32xf32>
    %c2_83 = arith.constant 2 : index
    %c0_84 = arith.constant 0 : index
    %c0_85 = arith.constant 0 : index
    %122 = vector.load %arg7[%c2_83, %c0_84, %c0_85] : memref<4x128x32xf32, #tpu.memory_space<vmem>>, vector<1x128x32xf32>
    %123 = vector.shape_cast %122 : vector<1x128x32xf32> to vector<128x32xf32>
    %cst_86 = arith.constant dense<0.000000e+00> : vector<16x32xf32>
    %124 = tpu.matmul %25, %123, %cst_86 {dimension_numbers = #tpu.dot_dimension_numbers<[1], [0], [0], [1], [0, 0, 1, 1], [], []>} : vector<16x128xf32>, vector<128x32xf32>, vector<16x32xf32> -> vector<16x32xf32>
    %c2_87 = arith.constant 2 : index
    %c0_88 = arith.constant 0 : index
    %c0_89 = arith.constant 0 : index
    %125 = vector.load %arg8[%c2_87, %c0_88, %c0_89] : memref<4x1x32xf32, #tpu.memory_space<vmem>>, vector<1x1x32xf32>
    %126 = vector.shape_cast %125 : vector<1x1x32xf32> to vector<1x32xf32>
    %127 = vector.broadcast %126 : vector<1x32xf32> to vector<16x32xf32>
    %128 = arith.addf %124, %127 : vector<16x32xf32>
    %c2_90 = arith.constant 2 : index
    %c0_91 = arith.constant 0 : index
    %c0_92 = arith.constant 0 : index
    %129 = vector.load %arg9[%c2_90, %c0_91, %c0_92] : memref<4x128x32xf32, #tpu.memory_space<vmem>>, vector<1x128x32xf32>
    %130 = vector.shape_cast %129 : vector<1x128x32xf32> to vector<128x32xf32>
    %cst_93 = arith.constant dense<0.000000e+00> : vector<16x32xf32>
    %131 = tpu.matmul %25, %130, %cst_93 {dimension_numbers = #tpu.dot_dimension_numbers<[1], [0], [0], [1], [0, 0, 1, 1], [], []>} : vector<16x128xf32>, vector<128x32xf32>, vector<16x32xf32> -> vector<16x32xf32>
    %c2_94 = arith.constant 2 : index
    %c0_95 = arith.constant 0 : index
    %c0_96 = arith.constant 0 : index
    %132 = vector.load %arg10[%c2_94, %c0_95, %c0_96] : memref<4x1x32xf32, #tpu.memory_space<vmem>>, vector<1x1x32xf32>
    %133 = vector.shape_cast %132 : vector<1x1x32xf32> to vector<1x32xf32>
    %134 = vector.broadcast %133 : vector<1x32xf32> to vector<16x32xf32>
    %135 = arith.addf %131, %134 : vector<16x32xf32>
    "tpu.trace_start"() <{level = 10 : i32, message = "qd,kd->qk"}> : () -> ()
    %cst_97 = arith.constant dense<0.000000e+00> : vector<16x16xf32>
    %136 = tpu.matmul %121, %128, %cst_97 {dimension_numbers = #tpu.dot_dimension_numbers<[1], [1], [0], [0], [0, 0, 1, 0], [], []>} : vector<16x32xf32>, vector<16x32xf32>, vector<16x16xf32> -> vector<16x16xf32>
    "tpu.trace_stop"() : () -> ()
    %cst_98 = arith.constant 0.176776692 : f32
    %137 = vector.broadcast %cst_98 : f32 to vector<16x16xf32>
    %138 = arith.mulf %136, %137 : vector<16x16xf32>
    %cst_99 = arith.constant 0.000000e+00 : f32
    %139 = vector.broadcast %cst_99 : f32 to vector<1x16xf32>
    %140 = arith.cmpf oeq, %3, %139 : vector<1x16xf32>
    %cst_100 = arith.constant -1.000000e+09 : f32
    %141 = vector.shape_cast %140 : vector<1x16xi1> to vector<1x16xi1>
    %142 = vector.broadcast %141 : vector<1x16xi1> to vector<16x16xi1>
    %143 = vector.broadcast %cst_100 : f32 to vector<16x16xf32>
    %144 = arith.select %142, %143, %138 : vector<16x16xi1>, vector<16x16xf32>
    %cst_101 = arith.constant dense<0xFF800000> : vector<16xf32>
    %145 = vector.multi_reduction <maximumf>, %144, %cst_101 [1] : vector<16x16xf32> to vector<16xf32>
    %146 = vector.shape_cast %145 : vector<16xf32> to vector<16x1xf32>
    %147 = vector.broadcast %146 : vector<16x1xf32> to vector<16x16xf32>
    %148 = arith.subf %144, %147 : vector<16x16xf32>
    %149 = math.exp %148 : vector<16x16xf32>
    %cst_102 = arith.constant dense<0.000000e+00> : vector<16xf32>
    %150 = vector.multi_reduction <add>, %149, %cst_102 [1] : vector<16x16xf32> to vector<16xf32>
    %151 = vector.shape_cast %150 : vector<16xf32> to vector<16x1xf32>
    %152 = vector.broadcast %151 : vector<16x1xf32> to vector<16x16xf32>
    %153 = arith.divf %149, %152 : vector<16x16xf32>
    %cst_103 = arith.constant dense<0.000000e+00> : vector<16x32xf32>
    %154 = tpu.matmul %153, %135, %cst_103 {dimension_numbers = #tpu.dot_dimension_numbers<[1], [0], [0], [1], [0, 0, 1, 1], [], []>} : vector<16x16xf32>, vector<16x32xf32>, vector<16x32xf32> -> vector<16x32xf32>
    %c2_104 = arith.constant 2 : index
    %c0_105 = arith.constant 0 : index
    %c0_106 = arith.constant 0 : index
    %155 = vector.load %arg11[%c2_104, %c0_105, %c0_106] : memref<4x32x128xf32, #tpu.memory_space<vmem>>, vector<1x32x128xf32>
    %156 = vector.shape_cast %155 : vector<1x32x128xf32> to vector<32x128xf32>
    %cst_107 = arith.constant dense<0.000000e+00> : vector<16x128xf32>
    %157 = tpu.matmul %154, %156, %cst_107 {dimension_numbers = #tpu.dot_dimension_numbers<[1], [0], [0], [1], [0, 0, 1, 1], [], []>} : vector<16x32xf32>, vector<32x128xf32>, vector<16x128xf32> -> vector<16x128xf32>
    %158 = arith.addf %114, %157 : vector<16x128xf32>
    %c3 = arith.constant 3 : index
    %c0_108 = arith.constant 0 : index
    %c0_109 = arith.constant 0 : index
    %159 = vector.load %arg5[%c3, %c0_108, %c0_109] : memref<4x128x32xf32, #tpu.memory_space<vmem>>, vector<1x128x32xf32>
    %160 = vector.shape_cast %159 : vector<1x128x32xf32> to vector<128x32xf32>
    %cst_110 = arith.constant dense<0.000000e+00> : vector<16x32xf32>
    %161 = tpu.matmul %25, %160, %cst_110 {dimension_numbers = #tpu.dot_dimension_numbers<[1], [0], [0], [1], [0, 0, 1, 1], [], []>} : vector<16x128xf32>, vector<128x32xf32>, vector<16x32xf32> -> vector<16x32xf32>
    %c3_111 = arith.constant 3 : index
    %c0_112 = arith.constant 0 : index
    %c0_113 = arith.constant 0 : index
    %162 = vector.load %arg6[%c3_111, %c0_112, %c0_113] : memref<4x1x32xf32, #tpu.memory_space<vmem>>, vector<1x1x32xf32>
    %163 = vector.shape_cast %162 : vector<1x1x32xf32> to vector<1x32xf32>
    %164 = vector.broadcast %163 : vector<1x32xf32> to vector<16x32xf32>
    %165 = arith.addf %161, %164 : vector<16x32xf32>
    %c3_114 = arith.constant 3 : index
    %c0_115 = arith.constant 0 : index
    %c0_116 = arith.constant 0 : index
    %166 = vector.load %arg7[%c3_114, %c0_115, %c0_116] : memref<4x128x32xf32, #tpu.memory_space<vmem>>, vector<1x128x32xf32>
    %167 = vector.shape_cast %166 : vector<1x128x32xf32> to vector<128x32xf32>
    %cst_117 = arith.constant dense<0.000000e+00> : vector<16x32xf32>
    %168 = tpu.matmul %25, %167, %cst_117 {dimension_numbers = #tpu.dot_dimension_numbers<[1], [0], [0], [1], [0, 0, 1, 1], [], []>} : vector<16x128xf32>, vector<128x32xf32>, vector<16x32xf32> -> vector<16x32xf32>
    %c3_118 = arith.constant 3 : index
    %c0_119 = arith.constant 0 : index
    %c0_120 = arith.constant 0 : index
    %169 = vector.load %arg8[%c3_118, %c0_119, %c0_120] : memref<4x1x32xf32, #tpu.memory_space<vmem>>, vector<1x1x32xf32>
    %170 = vector.shape_cast %169 : vector<1x1x32xf32> to vector<1x32xf32>
    %171 = vector.broadcast %170 : vector<1x32xf32> to vector<16x32xf32>
    %172 = arith.addf %168, %171 : vector<16x32xf32>
    %c3_121 = arith.constant 3 : index
    %c0_122 = arith.constant 0 : index
    %c0_123 = arith.constant 0 : index
    %173 = vector.load %arg9[%c3_121, %c0_122, %c0_123] : memref<4x128x32xf32, #tpu.memory_space<vmem>>, vector<1x128x32xf32>
    %174 = vector.shape_cast %173 : vector<1x128x32xf32> to vector<128x32xf32>
    %cst_124 = arith.constant dense<0.000000e+00> : vector<16x32xf32>
    %175 = tpu.matmul %25, %174, %cst_124 {dimension_numbers = #tpu.dot_dimension_numbers<[1], [0], [0], [1], [0, 0, 1, 1], [], []>} : vector<16x128xf32>, vector<128x32xf32>, vector<16x32xf32> -> vector<16x32xf32>
    %c3_125 = arith.constant 3 : index
    %c0_126 = arith.constant 0 : index
    %c0_127 = arith.constant 0 : index
    %176 = vector.load %arg10[%c3_125, %c0_126, %c0_127] : memref<4x1x32xf32, #tpu.memory_space<vmem>>, vector<1x1x32xf32>
    %177 = vector.shape_cast %176 : vector<1x1x32xf32> to vector<1x32xf32>
    %178 = vector.broadcast %177 : vector<1x32xf32> to vector<16x32xf32>
    %179 = arith.addf %175, %178 : vector<16x32xf32>
    "tpu.trace_start"() <{level = 10 : i32, message = "qd,kd->qk"}> : () -> ()
    %cst_128 = arith.constant dense<0.000000e+00> : vector<16x16xf32>
    %180 = tpu.matmul %165, %172, %cst_128 {dimension_numbers = #tpu.dot_dimension_numbers<[1], [1], [0], [0], [0, 0, 1, 0], [], []>} : vector<16x32xf32>, vector<16x32xf32>, vector<16x16xf32> -> vector<16x16xf32>
    "tpu.trace_stop"() : () -> ()
    %cst_129 = arith.constant 0.176776692 : f32
    %181 = vector.broadcast %cst_129 : f32 to vector<16x16xf32>
    %182 = arith.mulf %180, %181 : vector<16x16xf32>
    %cst_130 = arith.constant 0.000000e+00 : f32
    %183 = vector.broadcast %cst_130 : f32 to vector<1x16xf32>
    %184 = arith.cmpf oeq, %3, %183 : vector<1x16xf32>
    %cst_131 = arith.constant -1.000000e+09 : f32
    %185 = vector.shape_cast %184 : vector<1x16xi1> to vector<1x16xi1>
    %186 = vector.broadcast %185 : vector<1x16xi1> to vector<16x16xi1>
    %187 = vector.broadcast %cst_131 : f32 to vector<16x16xf32>
    %188 = arith.select %186, %187, %182 : vector<16x16xi1>, vector<16x16xf32>
    %cst_132 = arith.constant dense<0xFF800000> : vector<16xf32>
    %189 = vector.multi_reduction <maximumf>, %188, %cst_132 [1] : vector<16x16xf32> to vector<16xf32>
    %190 = vector.shape_cast %189 : vector<16xf32> to vector<16x1xf32>
    %191 = vector.broadcast %190 : vector<16x1xf32> to vector<16x16xf32>
    %192 = arith.subf %188, %191 : vector<16x16xf32>
    %193 = math.exp %192 : vector<16x16xf32>
    %cst_133 = arith.constant dense<0.000000e+00> : vector<16xf32>
    %194 = vector.multi_reduction <add>, %193, %cst_133 [1] : vector<16x16xf32> to vector<16xf32>
    %195 = vector.shape_cast %194 : vector<16xf32> to vector<16x1xf32>
    %196 = vector.broadcast %195 : vector<16x1xf32> to vector<16x16xf32>
    %197 = arith.divf %193, %196 : vector<16x16xf32>
    %cst_134 = arith.constant dense<0.000000e+00> : vector<16x32xf32>
    %198 = tpu.matmul %197, %179, %cst_134 {dimension_numbers = #tpu.dot_dimension_numbers<[1], [0], [0], [1], [0, 0, 1, 1], [], []>} : vector<16x16xf32>, vector<16x32xf32>, vector<16x32xf32> -> vector<16x32xf32>
    %c3_135 = arith.constant 3 : index
    %c0_136 = arith.constant 0 : index
    %c0_137 = arith.constant 0 : index
    %199 = vector.load %arg11[%c3_135, %c0_136, %c0_137] : memref<4x32x128xf32, #tpu.memory_space<vmem>>, vector<1x32x128xf32>
    %200 = vector.shape_cast %199 : vector<1x32x128xf32> to vector<32x128xf32>
    %cst_138 = arith.constant dense<0.000000e+00> : vector<16x128xf32>
    %201 = tpu.matmul %198, %200, %cst_138 {dimension_numbers = #tpu.dot_dimension_numbers<[1], [0], [0], [1], [0, 0, 1, 1], [], []>} : vector<16x32xf32>, vector<32x128xf32>, vector<16x128xf32> -> vector<16x128xf32>
    %202 = arith.addf %158, %201 : vector<16x128xf32>
    %c0_139 = arith.constant 0 : index
    %c0_140 = arith.constant 0 : index
    %203 = vector.load %arg12[%c0_139, %c0_140] : memref<1x128xf32, #tpu.memory_space<vmem>>, vector<1x128xf32>
    %204 = vector.broadcast %203 : vector<1x128xf32> to vector<16x128xf32>
    %205 = arith.addf %202, %204 : vector<16x128xf32>
    %206 = arith.addf %1, %205 : vector<16x128xf32>
    %c0_141 = arith.constant 0 : index
    %c0_142 = arith.constant 0 : index
    %207 = vector.load %arg13[%c0_141, %c0_142] : memref<1x128xf32, #tpu.memory_space<vmem>>, vector<1x128xf32>
    %c0_143 = arith.constant 0 : index
    %c0_144 = arith.constant 0 : index
    %208 = vector.load %arg14[%c0_143, %c0_144] : memref<1x128xf32, #tpu.memory_space<vmem>>, vector<1x128xf32>
    %cst_145 = arith.constant dense<0.000000e+00> : vector<16xf32>
    %209 = vector.multi_reduction <add>, %206, %cst_145 [1] : vector<16x128xf32> to vector<16xf32>
    %210 = vector.shape_cast %209 : vector<16xf32> to vector<16x1xf32>
    %cst_146 = arith.constant 1.280000e+02 : f32
    %211 = vector.broadcast %cst_146 : f32 to vector<16x1xf32>
    %212 = arith.divf %210, %211 : vector<16x1xf32>
    %213 = vector.broadcast %212 : vector<16x1xf32> to vector<16x128xf32>
    %214 = arith.subf %206, %213 : vector<16x128xf32>
    %215 = arith.mulf %214, %214 : vector<16x128xf32>
    %cst_147 = arith.constant dense<0.000000e+00> : vector<16xf32>
    %216 = vector.multi_reduction <add>, %215, %cst_147 [1] : vector<16x128xf32> to vector<16xf32>
    %217 = vector.shape_cast %216 : vector<16xf32> to vector<16x1xf32>
    %cst_148 = arith.constant 1.270000e+02 : f32
    %218 = vector.broadcast %cst_148 : f32 to vector<16x1xf32>
    %219 = arith.divf %217, %218 : vector<16x1xf32>
    %220 = math.sqrt %219 : vector<16x1xf32>
    %221 = vector.broadcast %207 : vector<1x128xf32> to vector<16x128xf32>
    %222 = arith.mulf %221, %214 : vector<16x128xf32>
    %cst_149 = arith.constant 9.99999997E-7 : f32
    %223 = vector.broadcast %cst_149 : f32 to vector<16x1xf32>
    %224 = arith.addf %220, %223 : vector<16x1xf32>
    %225 = vector.broadcast %224 : vector<16x1xf32> to vector<16x128xf32>
    %226 = arith.divf %222, %225 : vector<16x128xf32>
    %227 = vector.broadcast %208 : vector<1x128xf32> to vector<16x128xf32>
    %228 = arith.addf %226, %227 : vector<16x128xf32>
    %c0_150 = arith.constant 0 : index
    %c0_151 = arith.constant 0 : index
    %229 = vector.load %arg15[%c0_150, %c0_151] : memref<128x256xf32, #tpu.memory_space<vmem>>, vector<128x256xf32>
    %cst_152 = arith.constant dense<0.000000e+00> : vector<16x256xf32>
    %230 = tpu.matmul %228, %229, %cst_152 {dimension_numbers = #tpu.dot_dimension_numbers<[1], [0], [0], [1], [0, 0, 1, 1], [], []>} : vector<16x128xf32>, vector<128x256xf32>, vector<16x256xf32> -> vector<16x256xf32>
    %c0_153 = arith.constant 0 : index
    %c0_154 = arith.constant 0 : index
    %231 = vector.load %arg16[%c0_153, %c0_154] : memref<1x256xf32, #tpu.memory_space<vmem>>, vector<1x256xf32>
    %232 = vector.broadcast %231 : vector<1x256xf32> to vector<16x256xf32>
    %233 = arith.addf %230, %232 : vector<16x256xf32>
    %cst_155 = arith.constant 0.000000e+00 : f32
    %234 = vector.broadcast %cst_155 : f32 to vector<16x256xf32>
    %235 = arith.maximumf %233, %234 : vector<16x256xf32>
    %c0_156 = arith.constant 0 : index
    %c0_157 = arith.constant 0 : index
    %236 = vector.load %arg17[%c0_156, %c0_157] : memref<256x128xf32, #tpu.memory_space<vmem>>, vector<256x128xf32>
    %cst_158 = arith.constant dense<0.000000e+00> : vector<16x128xf32>
    %237 = tpu.matmul %235, %236, %cst_158 {dimension_numbers = #tpu.dot_dimension_numbers<[1], [0], [0], [1], [0, 0, 1, 1], [], []>} : vector<16x256xf32>, vector<256x128xf32>, vector<16x128xf32> -> vector<16x128xf32>
    %c0_159 = arith.constant 0 : index
    %c0_160 = arith.constant 0 : index
    %238 = vector.load %arg18[%c0_159, %c0_160] : memref<1x128xf32, #tpu.memory_space<vmem>>, vector<1x128xf32>
    %239 = vector.broadcast %238 : vector<1x128xf32> to vector<16x128xf32>
    %240 = arith.addf %237, %239 : vector<16x128xf32>
    %241 = arith.addf %206, %240 : vector<16x128xf32>
    %c0_161 = arith.constant 0 : index
    %c0_162 = arith.constant 0 : index
    %c0_163 = arith.constant 0 : index
    %242 = vector.load %arg19[%c0_161, %c0_162, %c0_163] : memref<1x16x128xf32, #tpu.memory_space<vmem>>, vector<1x16x128xf32>
    %243 = vector.shape_cast %242 : vector<1x16x128xf32> to vector<16x128xf32>
    %244 = vector.shape_cast %241 : vector<16x128xf32> to vector<1x16x128xf32>
    tpu.vector_store %arg19[%c0_161, %c0_162, %c0_163], %244 {strides = array<i32>} : memref<1x16x128xf32, #tpu.memory_space<vmem>>, vector<1x16x128xf32>,
    return
  }
  func.func @transform_0(%arg0: i32) -> (i32, i32, i32) {
    %c0_i32 = arith.constant 0 : i32
    %c0_i32_0 = arith.constant 0 : i32
    %c0_i32_1 = arith.constant 0 : i32
    return %arg0, %c0_i32, %c0_i32_0 : i32, i32, i32
  }
  func.func @transform_1(%arg0: i32) -> (i32, i32, i32) {
    %c0_i32 = arith.constant 0 : i32
    %c0_i32_0 = arith.constant 0 : i32
    %c0_i32_1 = arith.constant 0 : i32
    return %arg0, %c0_i32, %c0_i32_0 : i32, i32, i32
  }
  func.func @transform_2(%arg0: i32) -> (i32, i32) {
    %c0_i32 = arith.constant 0 : i32
    %c0_i32_0 = arith.constant 0 : i32
    %c0_i32_1 = arith.constant 0 : i32
    return %c0_i32, %c0_i32_0 : i32, i32
  }
  func.func @transform_3(%arg0: i32) -> (i32, i32) {
    %c0_i32 = arith.constant 0 : i32
    %c0_i32_0 = arith.constant 0 : i32
    %c0_i32_1 = arith.constant 0 : i32
    return %c0_i32, %c0_i32_0 : i32, i32
  }
  func.func @transform_4(%arg0: i32) -> (i32, i32, i32) {
    %c0_i32 = arith.constant 0 : i32
    %c0_i32_0 = arith.constant 0 : i32
    %c0_i32_1 = arith.constant 0 : i32
    %c0_i32_2 = arith.constant 0 : i32
    return %c0_i32, %c0_i32_0, %c0_i32_1 : i32, i32, i32
  }
  func.func @transform_5(%arg0: i32) -> (i32, i32, i32) {
    %c0_i32 = arith.constant 0 : i32
    %c0_i32_0 = arith.constant 0 : i32
    %c0_i32_1 = arith.constant 0 : i32
    %c0_i32_2 = arith.constant 0 : i32
    return %c0_i32, %c0_i32_0, %c0_i32_1 : i32, i32, i32
  }
  func.func @transform_6(%arg0: i32) -> (i32, i32, i32) {
    %c0_i32 = arith.constant 0 : i32
    %c0_i32_0 = arith.constant 0 : i32
    %c0_i32_1 = arith.constant 0 : i32
    %c0_i32_2 = arith.constant 0 : i32
    return %c0_i32, %c0_i32_0, %c0_i32_1 : i32, i32, i32
  }
  func.func @transform_7(%arg0: i32) -> (i32, i32, i32) {
    %c0_i32 = arith.constant 0 : i32
    %c0_i32_0 = arith.constant 0 : i32
    %c0_i32_1 = arith.constant 0 : i32
    %c0_i32_2 = arith.constant 0 : i32
    return %c0_i32, %c0_i32_0, %c0_i32_1 : i32, i32, i32
  }
  func.func @transform_8(%arg0: i32) -> (i32, i32, i32) {
    %c0_i32 = arith.constant 0 : i32
    %c0_i32_0 = arith.constant 0 : i32
    %c0_i32_1 = arith.constant 0 : i32
    %c0_i32_2 = arith.constant 0 : i32
    return %c0_i32, %c0_i32_0, %c0_i32_1 : i32, i32, i32
  }
  func.func @transform_9(%arg0: i32) -> (i32, i32, i32) {
    %c0_i32 = arith.constant 0 : i32
    %c0_i32_0 = arith.constant 0 : i32
    %c0_i32_1 = arith.constant 0 : i32
    %c0_i32_2 = arith.constant 0 : i32
    return %c0_i32, %c0_i32_0, %c0_i32_1 : i32, i32, i32
  }
  func.func @transform_10(%arg0: i32) -> (i32, i32, i32) {
    %c0_i32 = arith.constant 0 : i32
    %c0_i32_0 = arith.constant 0 : i32
    %c0_i32_1 = arith.constant 0 : i32
    %c0_i32_2 = arith.constant 0 : i32
    return %c0_i32, %c0_i32_0, %c0_i32_1 : i32, i32, i32
  }
  func.func @transform_11(%arg0: i32) -> (i32, i32) {
    %c0_i32 = arith.constant 0 : i32
    %c0_i32_0 = arith.constant 0 : i32
    %c0_i32_1 = arith.constant 0 : i32
    return %c0_i32, %c0_i32_0 : i32, i32
  }
  func.func @transform_12(%arg0: i32) -> (i32, i32) {
    %c0_i32 = arith.constant 0 : i32
    %c0_i32_0 = arith.constant 0 : i32
    %c0_i32_1 = arith.constant 0 : i32
    return %c0_i32, %c0_i32_0 : i32, i32
  }
  func.func @transform_13(%arg0: i32) -> (i32, i32) {
    %c0_i32 = arith.constant 0 : i32
    %c0_i32_0 = arith.constant 0 : i32
    %c0_i32_1 = arith.constant 0 : i32
    return %c0_i32, %c0_i32_0 : i32, i32
  }
  func.func @transform_14(%arg0: i32) -> (i32, i32) {
    %c0_i32 = arith.constant 0 : i32
    %c0_i32_0 = arith.constant 0 : i32
    %c0_i32_1 = arith.constant 0 : i32
    return %c0_i32, %c0_i32_0 : i32, i32
  }
  func.func @transform_15(%arg0: i32) -> (i32, i32) {
    %c0_i32 = arith.constant 0 : i32
    %c0_i32_0 = arith.constant 0 : i32
    %c0_i32_1 = arith.constant 0 : i32
    return %c0_i32, %c0_i32_0 : i32, i32
  }
  func.func @transform_16(%arg0: i32) -> (i32, i32) {
    %c0_i32 = arith.constant 0 : i32
    %c0_i32_0 = arith.constant 0 : i32
    %c0_i32_1 = arith.constant 0 : i32
    return %c0_i32, %c0_i32_0 : i32, i32
  }
  func.func @transform_17(%arg0: i32) -> (i32, i32) {
    %c0_i32 = arith.constant 0 : i32
    %c0_i32_0 = arith.constant 0 : i32
    %c0_i32_1 = arith.constant 0 : i32
    return %c0_i32, %c0_i32_0 : i32, i32
  }
  func.func @transform_18(%arg0: i32) -> (i32, i32, i32) {
    %c0_i32 = arith.constant 0 : i32
    %c0_i32_0 = arith.constant 0 : i32
    %c0_i32_1 = arith.constant 0 : i32
    return %arg0, %c0_i32, %c0_i32_0 : i32, i32, i32
  }
}

</mosaic_0001>

<bundles_post_ra>
// kernel: tpu_custom_call.1
= control target key start
LH: loop header
LB: loop body
LE: loop exit
PB: predicated region body
PF: predicated region fallthrough
CT: control target
= control target key end

     0   :  { %s3841_s0 = inlined_call_operand.vmem [shape: f32[2,16,128], index: 0, kind: input, shape index: {}]   ;;  %s3842_s1 = inlined_call_operand.vmem [shape: f32[2,1,16], index: 1, kind: input, shape index: {}]   ;;  %s3843_s2 = inlined_call_operand.vmem [shape: f32[1,128], index: 2, kind: input, shape index: {}]   ;;  %s3844_s3 = inlined_call_operand.vmem [shape: f32[1,128], index: 3, kind: input, shape index: {}]   ;;  %s3845_s4 = inlined_call_operand.vmem [shape: f32[4,128,32], index: 4, kind: input, shape index: {}]   ;;  %s3846_s5 = inlined_call_operand.vmem [shape: f32[4,1,32], index: 5, kind: input, shape index: {}]   ;;  %s3847_s6 = inlined_call_operand.vmem [shape: f32[4,128,32], index: 6, kind: input, shape index: {}]   ;;  %s3848_s7 = inlined_call_operand.vmem [shape: f32[4,1,32], index: 7, kind: input, shape index: {}]   ;;  %s3849_s8 = inlined_call_operand.vmem [shape: f32[4,128,32], index: 8, kind: input, shape index: {}]   ;;  %s3850_s9 = inlined_call_operand.vmem [shape: f32[4,1,32], index: 9, kind: input, shape index: {}]   ;;  %s3851_s10 = inlined_call_operand.vmem [shape: f32[4,32,128], index: 10, kind: input, shape index: {}]   ;;  %s3852_s11 = inlined_call_operand.vmem [shape: f32[1,128], index: 11, kind: input, shape index: {}]   ;;  %s3853_s12 = inlined_call_operand.vmem [shape: f32[1,128], index: 12, kind: input, shape index: {}]   ;;  %s3854_s13 = inlined_call_operand.vmem [shape: f32[1,128], index: 13, kind: input, shape index: {}]   ;;  %s3855_s14 = inlined_call_operand.vmem [shape: f32[128,256], index: 14, kind: input, shape index: {}]   ;;  %s3856_s15 = inlined_call_operand.vmem [shape: f32[1,256], index: 15, kind: input, shape index: {}]   ;;  %s3857_s16 = inlined_call_operand.vmem [shape: f32[256,128], index: 16, kind: input, shape index: {}]   ;;  %s3858_s17 = inlined_call_operand.vmem [shape: f32[1,128], index: 17, kind: input, shape index: {}]   ;;  %s3859_s18 = inlined_call_operand.hbm [shape: f32[2,16,128], index: 18, kind: output, shape index: {}]  }
   0x1   :  { %3866 = sst [smem:[#allocation11_spill]] %s3841_s0 }
   0x2   :  { %3867 = sst [smem:[#allocation12_spill]] %s3842_s1 }
   0x3   :  { %3868 = sst [smem:[#allocation13_spill]] %s3843_s2 }
   0x4   :  { %3869 = sst [smem:[#allocation14_spill]] %s3844_s3 }
   0x5   :  { %3870 = sst [smem:[#allocation15_spill]] %s3845_s4 }
   0x6   :  { %23 = vsyncpa [#allocation3], 0 }
   0x7   :  { %25 = vsyncpa [#allocation3 + $0x1], 0  ;;  %s2676_s27 = smov 0   ;;  %s2678_s28 = smov 0  }
   0x8   :  { %s2680_s29 = smov 0   ;;  %s2682_s30 = smov 0  }
   0x9 LB: > { %3871 = sst [smem:[#allocation5_spill]] %s2562_s27  ;;  %s2697_s0 = sadd.s32 4294967295, %s2574_s30   ;;  %s2574_s30 = sphi %s2682_s30, %s3889_s30   ;;  %s2570_s29 = sphi %s2680_s29, %s3891_s29   ;;  %s2566_s28 = sphi %s2678_s28, %s3893_s28   ;;  %s2562_s27 = sphi %s2676_s27, %s3892_s27  }
   0xa   : > { %3872 = sst [smem:[#allocation6_spill]] %s2570_s29  ;;  %s2185_s19 = sadd.s32 4294967294, %s2574_s30  }
   0xb   : > { %3873 = sst [smem:[#allocation7_spill]] %s2574_s30  ;;  %s2701_s1 = sadd.s32 1, %s2574_s30  }
   0xc   : > { %3874 = sst [smem:[#allocation8_spill]] %s2701_s1  ;;  %s426_s20 = sadd.s32 1, %s2570_s29 }
   0xd   : > { %s423_s21 = ssub.s32 %s2574_s30, %s2701_s1  ;;  %p436_p0 = scmp.ne.s32.totalorder %s2570_s29, %s2566_s28 }
   0xe   : > { %p424_p1 = scmp.eq.s32.totalorder %s423_s21, 0  ;;  %p437_p2 = scmp.eq.s32.totalorder %s2697_s0, 1 }
   0xf   : > { %p442_p3 = scmp.ne.s32.totalorder %s2566_s28, %s2562_s27  ;;  %p443_p4 = scmp.eq.s32.totalorder %s2185_s19, 1 }
  0x10   : > { %s2712_s22 = scalar_select %p424_p1, %s2570_s29, %s426_s20  }
  0x11   : > { %p2714_p5 = por %p437_p2, %p436_p0  ;;  %p2718_p6 = por %p443_p4, %p442_p3 }
  0x12   : > { %3875 = sst [smem:[#allocation9_spill]] %s2712_s22  ;;  %p2188_p7 = scmp.ge.s32.totalorder %s2574_s30, 1 }
  0x13   : > { %s3877_s23 = scalar_select %p2718_p6, 1, 0 }
  0x14   : > { %p523_p8 = scmp.lt.s32.totalorder %s2574_s30, 3 }
  0x15   : > { %3878 = sst [smem:[#allocation10_spill]] %s3877_s23 }
  0x16   : > { %p524_p9 = pnand %p2188_p7, %p523_p8 }
  0x17   : > { %p580_p10 = scmp.lt.s32.totalorder (!%p524_p9), %s2697_s0, 1  ;;  %s3879_s20 = sld [smem:[#allocation11_spill]] (!%p524_p9) }
  0x18   : > { %527 = sbr.rel (%p524_p9) target bundleno = 3330 (0xd02), region = 92  ;;  %s3880_s4 = sld [smem:[#allocation15_spill]] (!%p524_p9) }
  0x19   : > { %s3881_s22 = sld [smem:[#allocation13_spill]] (!%p524_p9)  ;;  %s577_s1 = sand.u32 (!%p524_p9), 1, %s2566_s28  }
  0x1a   : > { %s3882_s3 = sld [smem:[#allocation14_spill]] (!%p524_p9)  ;;  %s2395_s23 = sshll.u32 (!%p524_p9), %s2697_s0, 4 }
  0x1b   : > { %s2110_s30 = scalar_lea.hbm (!%p524_p9), %s3859_s18, %s2395_s23  ;;  %s2532_s23 = scalar_lea.hbm (!%p524_p9), %s3859_s18, 32 }
  0x1d   : > { %s2726_s24 = scalar_select %p580_p10, %s2697_s0, 1  ;;  %v2576_v2 = vmov 128.0   ;;  %v747_v5 = vld [vmem:[%s3847_s6 + $0x78] sm:$0xff]  ;;  %v746_v6 = vld [vmem:[%s3847_s6 + $0x70] sm:$0xff]  ;;  %v745_v7 = vld [vmem:[%s3847_s6 + $0x68] sm:$0xff]  ;;  %v2577_v30 = vmov 127.0  }
  0x1e   : > { %2458 = vrcp.f32 %v2576_v2  ;;  %752 = vmatpush.msra.mxu1 %v747_v5  ;;  %v744_v9 = vld [vmem:[%s3847_s6 + $0x60] sm:$0xff]  ;;  %v743_v10 = vld [vmem:[%s3847_s6 + $0x58] sm:$0xff]  ;;  %v742_v12 = vld [vmem:[%s3847_s6 + $0x50] sm:$0xff]  ;;  %vm818_vm14 = vcmask 261120   ;;  %s2099_s0 = scalar_lea.sflag [#allocation3], %s577_s1 }
  0x1f   : > { %s2394_s25 = sshll.u32 %s2726_s24, 4  ;;  %v741_v13 = vld [vmem:[%s3847_s6 + $0x48] sm:$0xff]  ;;  %v740_v15 = vld [vmem:[%s3847_s6 + $0x40] sm:$0xff]  ;;  %v704_v25 = vld [vmem:[%s3880_s4 + $0x78] sm:$0xff]  ;;  %2460 = vrcp.f32 %v2577_v30 }
  0x20   : > { %s2732_s21 = scalar_lea.vmem %s3879_s20, %s2394_s25  ;;  %753 = vmatpush.msra.mxu1 %v746_v6  ;;  %709 = vmatpush.msra.mxu0 %v704_v25  ;;  %v739_v26 = vld [vmem:[%s3847_s6 + $0x38] sm:$0xff]  ;;  %v703_v27 = vld [vmem:[%s3880_s4 + $0x70] sm:$0xff]  ;;  %v702_v29 = vld [vmem:[%s3880_s4 + $0x68] sm:$0xff]  ;;  %s3883_s20 = sld [smem:[#allocation12_spill]] }
  0x21   : > { %v588_v0 = vld [vmem:[%s2732_s21] sm:$0xff]  ;;  %v589_v1 = vld [vmem:[%s2732_s21 + $0x8] sm:$0xff]  ;;  %v738_v28 = vld [vmem:[%s3847_s6 + $0x30] sm:$0xff] }
  0x22   : > { %593 = vadd.xlane.f32.xlu0 %v588_v0  ;;  %754 = vmatpush.msra.mxu1 %v745_v7  ;;  %v737_v31 = vld [vmem:[%s3847_s6 + $0x28] sm:$0xff]  ;;  %v701_v32 = vld [vmem:[%s3880_s4 + $0x60] sm:$0xff]  ;;  %v700_v34 = vld [vmem:[%s3880_s4 + $0x58] sm:$0xff] }
  0x23   : > { %710 = vmatpush.msra.mxu0 %v703_v27  ;;  %v736_v33 = vld [vmem:[%s3847_s6 + $0x20] sm:$0xff]  ;;  %v735_v36 = vld [vmem:[%s3847_s6 + $0x18] sm:$0xff]  ;;  %v699_v37 = vld [vmem:[%s3880_s4 + $0x50] sm:$0xff] }
  0x24   : > { %v2459_v3 = vpop.eup %2458  ;;  %755 = vmatpush.msra.mxu1 %v744_v9  ;;  %v734_v38 = vld [vmem:[%s3847_s6 + $0x10] sm:$0xff]  ;;  %v698_v40 = vld [vmem:[%s3880_s4 + $0x48] sm:$0xff]  ;;  %v697_v42 = vld [vmem:[%s3880_s4 + $0x40] sm:$0xff] }
  0x25   : > { %v598_v4 = vmul.f32 128.0, %v2459_v3  ;;  %vm602_vm0 = vweird.f32 %v2459_v3  ;;  %711 = vmatpush.msra.mxu0 %v702_v29  ;;  %v2461_v35 = vpop.eup %2460  ;;  %v733_v41 = vld [vmem:[%s3847_s6 + $0x8] sm:$0xff]  ;;  %v732_v43 = vld [vmem:[%s3847_s6] sm:$0xff]  ;;  %v790_v44 = vld [vmem:[%s3849_s8 + $0x78] sm:$0xff] }
  0x26   : > { %756 = vmatpush.msra.mxu1 %v743_v10  ;;  %v615_v39 = vmul.f32 127.0, %v2461_v35  ;;  %795 = vmatpush.msra.mxu2 %v790_v44  ;;  %v696_v46 = vld [vmem:[%s3880_s4 + $0x38] sm:$0xff]  ;;  %v789_v48 = vld [vmem:[%s3849_s8 + $0x70] sm:$0xff]  ;;  %v788_v51 = vld [vmem:[%s3849_s8 + $0x68] sm:$0xff]  ;;  %vm619_vm1 = vweird.f32 %v2461_v35  ;;  %s587_s29 = scalar_lea.vmem %s3883_s20, %s2726_s24 }
  0x27   : > { %v599_v8 = vsub.f32 1.0, %v598_v4  ;;  %712 = vmatpush.msra.mxu0 %v701_v32  ;;  %v2247_v47 = vld [vmem:[%s3849_s8 + $0xf8] sm:$0xff]  ;;  %v695_v49 = vld [vmem:[%s3880_s4 + $0x30] sm:$0xff]  ;;  %v694_v53 = vld [vmem:[%s3880_s4 + $0x28] sm:$0xff] }
  0x28   : > { %757 = vmatpush.msra.mxu1 %v742_v12  ;;  %v616_v45 = vsub.f32 1.0, %v615_v39  ;;  %796 = vmatpush.msra.mxu2 %v789_v48  ;;  %v2246_v50 = vld [vmem:[%s3849_s8 + $0xf0] sm:$0xff]  ;;  %v2245_v54 = vld [vmem:[%s3849_s8 + $0xe8] sm:$0xff]  ;;  %v787_v55 = vld [vmem:[%s3849_s8 + $0x60] sm:$0xff] }
  0x29   : > { %v600_v11 = vmul.f32 %v2459_v3, %v599_v8  ;;  %713 = vmatpush.msra.mxu0 %v700_v34  ;;  %v693_v56 = vld [vmem:[%s3880_s4 + $0x20] sm:$0xff]  ;;  %v786_v58 = vld [vmem:[%s3849_s8 + $0x58] sm:$0xff]  ;;  %v785_v62 = vld [vmem:[%s3849_s8 + $0x50] sm:$0xff] }
  0x2a   : > { %595 = vadd.xlane.f32.xlu0 %v589_v1  ;;  %758 = vmatpush.msra.mxu1 %v741_v13  ;;  %v617_v52 = vmul.f32 %v2461_v35, %v616_v45  ;;  %v2244_v57 = vld [vmem:[%s3849_s8 + $0xe0] sm:$0xff]  ;;  %v692_v60 = vld [vmem:[%s3880_s4 + $0x18] sm:$0xff]  ;;  %v691_v63 = vld [vmem:[%s3880_s4 + $0x10] sm:$0xff] }
  0x2b   : > { %v601_v14 = vadd.f32 %v2459_v3, %v600_v11  ;;  %714 = vmatpush.msra.mxu0 %v699_v37  ;;  %797 = vmatpush.msra.mxu2 %v788_v51  ;;  %v2243_v61 = vld [vmem:[%s3849_s8 + $0xd8] sm:$0xff]  ;;  %v2241_v4 = vld [vmem:[%s3849_s8 + $0xc8] sm:$0xff]  ;;  %v783_v5 = vld [vmem:[%s3849_s8 + $0x40] sm:$0xff] }
  0x2c   : > { %759 = vmatpush.msra.mxu1 %v740_v15  ;;  %v618_v59 = vadd.f32 %v2461_v35, %v617_v52  ;;  %v689_v7 = vld [vmem:[%s3880_s4] sm:$0xff]  ;;  %v782_v10 = vld [vmem:[%s3849_s8 + $0x38] sm:$0xff]  ;;  %v781_v13 = vld [vmem:[%s3849_s8 + $0x30] sm:$0xff] }
  0x2d   : > { %v2760_v16 = vsel %vm602_vm0, %v2459_v3, %v601_v14  ;;  %715 = vmatpush.msra.mxu0 %v698_v40  ;;  %798 = vmatpush.msra.mxu2 %v787_v55  ;;  %v690_v3 = vld [vmem:[%s3880_s4 + $0x8] sm:$0xff]  ;;  %v2240_v8 = vld [vmem:[%s3849_s8 + $0xc0] sm:$0xff]  ;;  %v2230_v11 = vld [vmem:[%s3847_s6 + $0xf8] sm:$0xff] }
  0x2e   : > { %760 = vmatpush.msra.mxu1 %v739_v26  ;;  %v2877_v2 = vsel %vm619_vm1, %v2461_v35, %v618_v59  ;;  %v2239_v12 = vld [vmem:[%s3849_s8 + $0xb8] sm:$0xff]  ;;  %v2229_v14 = vld [vmem:[%s3847_s6 + $0xf0] sm:$0xff]  ;;  %v2236_v25 = vld [vmem:[%s3849_s8 + $0xa0] sm:$0xff]  ;;  %vm862_vm1 = vcmask 130048  }
  0x2f   : > { %716 = vmatpush.msra.mxu0 %v697_v42  ;;  %799 = vmatpush.msra.mxu2 %v786_v58  ;;  %v2238_v15 = vld [vmem:[%s3849_s8 + $0xb0] sm:$0xff]  ;;  %v2226_v29 = vld [vmem:[%s3847_s6 + $0xd8] sm:$0xff]  ;;  %v2224_v37 = vld [vmem:[%s3847_s6 + $0xc8] sm:$0xff] }
  0x30   : > { %761 = vmatpush.msra.mxu1 %v738_v28  ;;  %v778_v28 = vld [vmem:[%s3849_s8 + $0x18] sm:$0xff]  ;;  %v777_v32 = vld [vmem:[%s3849_s8 + $0x10] sm:$0xff]  ;;  %v2233_v39 = vld [vmem:[%s3849_s8 + $0x88] sm:$0xff] }
  0x31   : > { %717 = vmatpush.msra.mxu0 %v696_v46  ;;  %800 = vmatpush.msra.mxu2 %v785_v62  ;;  %v2234_v35 = vld [vmem:[%s3849_s8 + $0x90] sm:$0xff]  ;;  %v775_v40 = vld [vmem:[%s3849_s8] sm:$0xff]  ;;  %v2222_v45 = vld [vmem:[%s3847_s6 + $0xb8] sm:$0xff] }
  0x32   : > { %762 = vmatpush.msra.mxu1 %v737_v31  ;;  %v2235_v31 = vld [vmem:[%s3849_s8 + $0x98] sm:$0xff]  ;;  %v2221_v48 = vld [vmem:[%s3847_s6 + $0xb0] sm:$0xff]  ;;  %v2220_v52 = vld [vmem:[%s3847_s6 + $0xa8] sm:$0xff] }
  0x33   : > { %718 = vmatpush.msra.mxu0 %v695_v49  ;;  %v2219_v55 = vld [vmem:[%s3847_s6 + $0xa0] sm:$0xff]  ;;  %v2218_v59 = vld [vmem:[%s3847_s6 + $0x98] sm:$0xff]  ;;  %v2216_v62 = vld [vmem:[%s3847_s6 + $0x88] sm:$0xff] }
  0x34   : > { %763 = vmatpush.msra.mxu1 %v736_v33  ;;  %v2225_v33 = vld [vmem:[%s3847_s6 + $0xd0] sm:$0xff] }
  0x35   : > { %719 = vmatpush.msra.mxu0 %v694_v53 }
  0x36   : > { %764 = vmatpush.msra.mxu1 %v735_v36  ;;  %v776_v36 = vld [vmem:[%s3849_s8 + $0x8] sm:$0xff] }
  0x37   : > { %720 = vmatpush.msra.mxu0 %v693_v56 }
  0x38   : > { %765 = vmatpush.msra.mxu1 %v734_v38 }
  0x39   : > { %721 = vmatpush.msra.mxu0 %v692_v60  ;;  %v2217_v60 = vld [vmem:[%s3847_s6 + $0x90] sm:$0xff] }
  0x3a   : > { %766 = vmatpush.msra.mxu1 %v733_v41  ;;  %v2223_v41 = vld [vmem:[%s3847_s6 + $0xc0] sm:$0xff] }
  0x3b   : > { %722 = vmatpush.msra.mxu0 %v691_v63 }
  0x3c   : > { %767 = vmatpush.msra.mxu1 %v732_v43  ;;  %v2232_v43 = vld [vmem:[%s3849_s8 + $0x80] sm:$0xff] }
  0x3d   : > { %723 = vmatpush.msra.mxu0 %v690_v3 }
  0x3e   : > { %1056 = vmatpush.msrb.mxu1 %v2247_v47 }
  0x3f   : > { %724 = vmatpush.msra.mxu0 %v689_v7 }
  0x40   : > { %1057 = vmatpush.msrb.mxu1 %v2246_v50 }
  0x41   : > { %1011 = vmatpush.msrb.mxu0 %v2230_v11 }
  0x42   : > { %1058 = vmatpush.msrb.mxu1 %v2245_v54 }
  0x43   : > { %1012 = vmatpush.msrb.mxu0 %v2229_v14 }
  0x44   : > { %1059 = vmatpush.msrb.mxu1 %v2244_v57 }
  0x46   : > { %1060 = vmatpush.msrb.mxu1 %v2243_v61 }
  0x95   : > { %v594_v17 = vpop.xlane.xlu0 %593 }
  0x96   : > { %v604_v18 = vmul.f32 %v2760_v16, %v594_v17  ;;  %v780_v17 = vld [vmem:[%s3849_s8 + $0x28] sm:$0xff] }
  0x98   : > { %v2763_v19 = vsub.f32 %v588_v0, %v604_v18  ;;  %v2242_v0 = vld [vmem:[%s3849_s8 + $0xd0] sm:$0xff]  ;;  %v2228_v18 = vld [vmem:[%s3847_s6 + $0xe8] sm:$0xff] }
  0x99   : > { %1061 = vmatpush.msrb.mxu1 %v2242_v0  ;;  %1013 = vmatpush.msrb.mxu0 %v2228_v18  ;;  %v2215_v0 = vld [vmem:[%s3847_s6 + $0x80] sm:$0xff] }
  0x9a   : > { %v608_v20 = vmul.f32 %v2763_v19, %v2763_v19  ;;  %v2441_v18 = vld [vmem:[%s3882_s3] ss:$0 sm:$0xff] }
  0x9b   : > { %1062 = vmatpush.msrb.mxu1 %v2241_v4 }
  0x9c   : > { %610 = vadd.xlane.f32.xlu1 %v608_v20  ;;  %v2237_v20 = vld [vmem:[%s3849_s8 + $0xa8] sm:$0xff] }
  0x9d   : > { %v596_v21 = vpop.xlane.xlu0 %595  ;;  %1063 = vmatpush.msrb.mxu1 %v2240_v8 }
  0x9e   : > { %v605_v22 = vmul.f32 %v2760_v16, %v596_v21  ;;  %v779_v21 = vld [vmem:[%s3849_s8 + $0x20] sm:$0xff] }
  0x9f   : > { %1064 = vmatpush.msrb.mxu1 %v2239_v12 }
  0xa0   : > { %v2768_v23 = vsub.f32 %v589_v1, %v605_v22  ;;  %v784_v1 = vld [vmem:[%s3849_s8 + $0x48] sm:$0xff]  ;;  %v2227_v22 = vld [vmem:[%s3847_s6 + $0xe0] sm:$0xff] }
  0xa1   : > { %801 = vmatpush.msra.mxu2 %v784_v1  ;;  %1065 = vmatpush.msrb.mxu1 %v2238_v15 }
  0xa2   : > { %v609_v24 = vmul.f32 %v2768_v23, %v2768_v23  ;;  %1014 = vmatpush.msrb.mxu0 %v2227_v22 }
  0xa3   : > { %802 = vmatpush.msra.mxu2 %v783_v5  ;;  %1066 = vmatpush.msrb.mxu1 %v2237_v20 }
  0xa4   : > { %612 = vadd.xlane.f32.xlu1 %v609_v24  ;;  %1015 = vmatpush.msrb.mxu0 %v2226_v29 }
  0xa5   : > { %803 = vmatpush.msra.mxu2 %v782_v10  ;;  %1067 = vmatpush.msrb.mxu1 %v2236_v25  ;;  %v2440_v10 = vld [vmem:[%s3881_s22] ss:$0 sm:$0xff]  ;;  %s2189_s22 = sshll.u32 %s577_s1, 4 }
  0xa6   : > { %1016 = vmatpush.msrb.mxu0 %v2225_v33  ;;  %v2276_v33 = vld [vmem:[%s3880_s4 + $0x168] sm:$0xff]  ;;  %s579_s25 = scalar_lea.vmem [#allocation2], %s2189_s22 }
  0xa7   : > { %804 = vmatpush.msra.mxu2 %v781_v13  ;;  %1068 = vmatpush.msrb.mxu1 %v2235_v31  ;;  %s2111_s19 = sshll.u32 %s579_s25, 4  ;;  %s2112_s19 = int_to_ptr.vmem [resolvable:$true] %s2111_s19 }
  0xa8   : > { %1017 = vmatpush.msrb.mxu0 %v2224_v37  ;;  %v2275_v37 = vld [vmem:[%s3880_s4 + $0x160] sm:$0xff] }
  0xa9   : > { %805 = vmatpush.msra.mxu2 %v780_v17  ;;  %1069 = vmatpush.msrb.mxu1 %v2234_v35  ;;  %v650_v17 = vmul.f32 %v2440_v10, %v2763_v19 }
  0xaa   : > { %1018 = vmatpush.msrb.mxu0 %v2223_v41  ;;  %v2272_v41 = vld [vmem:[%s3880_s4 + $0x148] sm:$0xff] }
  0xab   : > { %806 = vmatpush.msra.mxu2 %v779_v21  ;;  %1070 = vmatpush.msrb.mxu1 %v2233_v39 }
  0xac   : > { %1019 = vmatpush.msrb.mxu0 %v2222_v45  ;;  %v2268_v45 = vld [vmem:[%s3880_s4 + $0x128] sm:$0xff] }
  0xad   : > { %807 = vmatpush.msra.mxu2 %v778_v28  ;;  %1071 = vmatpush.msrb.mxu1 %v2232_v43  ;;  %v2278_v28 = vld [vmem:[%s3880_s4 + $0x178] sm:$0xff] }
  0xae   : > { %1020 = vmatpush.msrb.mxu0 %v2221_v48  ;;  %v2270_v43 = vld [vmem:[%s3880_s4 + $0x138] sm:$0xff]  ;;  %v2265_v48 = vld [vmem:[%s3880_s4 + $0x110] sm:$0xff] }
  0xaf   : > { %808 = vmatpush.msra.mxu2 %v777_v32 }
  0xb0   : > { %1021 = vmatpush.msrb.mxu0 %v2220_v52 }
  0xb1   : > { %809 = vmatpush.msra.mxu2 %v776_v36 }
  0xb2   : > { %1022 = vmatpush.msrb.mxu0 %v2219_v55 }
  0xb3   : > { %810 = vmatpush.msra.mxu2 %v775_v40  ;;  %v2274_v40 = vld [vmem:[%s3880_s4 + $0x158] sm:$0xff] }
  0xb4   : > { %1023 = vmatpush.msrb.mxu0 %v2218_v59 }
  0xb6   : > { %1024 = vmatpush.msrb.mxu0 %v2217_v60  ;;  %v2444_v60 = vld [vmem:[%s3850_s9] ss:$0 sm:$0xff] }
  0xb8   : > { %1025 = vmatpush.msrb.mxu0 %v2216_v62 }
  0xba   : > { %1026 = vmatpush.msrb.mxu0 %v2215_v0 }
 0x10f   : > { %v611_v6 = vpop.xlane.xlu1 %610 }
 0x110   : > { %v2895_v9 = vmul.f32 %v2877_v2, %v611_v6 }
 0x112   : > { %2462 = vrsqrt.f32 %v2895_v9  ;;  %vm630_vm2 = vcmp.eq.f32.partialorder %v2895_v9, inf  ;;  %v633_v51 = vand.u32 2147483648, %v2895_v9  ;;  %vm632_vm3 = vcmp.eq.f32.partialorder %v2895_v9, 0.0 }
 0x117   : > { %v613_v24 = vpop.xlane.xlu1 %612 }
 0x118   : > { %v2463_v26 = vpop.eup %2462  ;;  %v2935_v27 = vmul.f32 %v2877_v2, %v613_v24 }
 0x119   : > { %v624_v30 = vmul.f32 %v2463_v26, %v2895_v9 }
 0x11a   : > { %2464 = vrsqrt.f32 %v2935_v27  ;;  %vm642_vm4 = vcmp.eq.f32.partialorder %v2935_v27, inf  ;;  %v645_v1 = vand.u32 2147483648, %v2935_v27  ;;  %vm644_vm5 = vcmp.eq.f32.partialorder %v2935_v27, 0.0 }
 0x11b   : > { %v625_v34 = vmul.f32 %v2463_v26, %v624_v30  ;;  %v2277_v30 = vld [vmem:[%s3880_s4 + $0x170] sm:$0xff] }
 0x11d   : > { %v626_v38 = vmul.f32 0.5, %v625_v34  ;;  %v651_v34 = vmul.f32 %v2440_v10, %v2768_v23  ;;  %v2273_v23 = vld [vmem:[%s3880_s4 + $0x150] sm:$0xff] }
 0x11f   : > { %v627_v42 = vsub.f32 1.5, %v626_v38 }
 0x120   : > { %v2465_v44 = vpop.eup %2464 }
 0x121   : > { %v628_v46 = vmul.f32 %v2463_v26, %v627_v42  ;;  %v636_v47 = vmul.f32 %v2465_v44, %v2935_v27  ;;  %v2271_v42 = vld [vmem:[%s3880_s4 + $0x140] sm:$0xff] }
 0x123   : > { %v629_v49 = vmul.f32 %v628_v46, %v2895_v9  ;;  %v637_v50 = vmul.f32 %v2465_v44, %v636_v47  ;;  %v2267_v46 = vld [vmem:[%s3880_s4 + $0x120] sm:$0xff]  ;;  %v2266_v47 = vld [vmem:[%s3880_s4 + $0x118] sm:$0xff] }
 0x125   : > { %v631_v53 = vsel %vm630_vm2, %v2895_v9, %v629_v49  ;;  %v638_v54 = vmul.f32 0.5, %v637_v50  ;;  %v2264_v49 = vld [vmem:[%s3880_s4 + $0x108] sm:$0xff]  ;;  %v2263_v50 = vld [vmem:[%s3880_s4 + $0x100] sm:$0xff] }
 0x126   : > { %v634_v56 = vsel %vm632_vm3, %v633_v51, %v631_v53 }
 0x127   : > { %v652_v57 = vadd.f32 1e-06, %v634_v56  ;;  %v639_v58 = vsub.f32 1.5, %v638_v54  ;;  %v2443_v54 = vld [vmem:[%s3848_s7] ss:$0 sm:$0xff] }
 0x129   : > { %2466 = vrcp.f32 %v652_v57  ;;  %v640_v61 = vmul.f32 %v2465_v44, %v639_v58  ;;  %v665_v9 = vand.u32 2147483648, %v652_v57  ;;  %v663_v12 = vand.u32 2147483647, %v652_v57  ;;  %v2269_v44 = vld [vmem:[%s3880_s4 + $0x130] sm:$0xff]  ;;  %v2442_v58 = vld [vmem:[%s3846_s5] ss:$0 sm:$0xff] }
 0x12a   : > { %vm659_vm7 = vweird.f32 %v652_v57 }
 0x12b   : > { %v641_v63 = vmul.f32 %v640_v61, %v2935_v27  ;;  %v666_v14 = vor.u32 1.1754944e-38, %v665_v9  ;;  %vm664_vm9 = vcmp.eq.f32.partialorder %v663_v12, 8.507059e+37  ;;  %v2446_v9 = vld [vmem:[%s3850_s9 + $0x1] ss:$0 sm:$0xff] }
 0x12d   : > { %v643_v3 = vsel %vm642_vm4, %v2935_v27, %v641_v63 }
 0x12e   : > { %v646_v5 = vsel %vm644_vm5, %v645_v1, %v643_v3 }
 0x12f   : > { %v2467_v4 = vpop.eup %2466  ;;  %v653_v7 = vadd.f32 1e-06, %v646_v5 }
 0x130   : > { %v655_v6 = vmul.f32 %v2467_v4, %v652_v57  ;;  %vm660_vm6 = vweird.f32 %v2467_v4 }
 0x131   : > { %2468 = vrcp.f32 %v653_v7  ;;  %vm661_vm8 = vmor %vm659_vm7, %vm660_vm6  ;;  %v680_v27 = vand.u32 2147483648, %v653_v7  ;;  %v678_v19 = vand.u32 2147483647, %v653_v7  ;;  %vm674_vm11 = vweird.f32 %v653_v7 }
 0x132   : > { %v656_v8 = vsub.f32 1.0, %v655_v6 }
 0x133   : > { %v681_v32 = vor.u32 1.1754944e-38, %v680_v27  ;;  %vm679_vm13 = vcmp.eq.f32.partialorder %v678_v19, 8.507059e+37 }
 0x134   : > { %v657_v11 = vmul.f32 %v2467_v4, %v656_v8 }
 0x136   : > { %v658_v13 = vadd.f32 %v2467_v4, %v657_v11 }
 0x137   : > { %v2469_v15 = vpop.eup %2468 }
 0x138   : > { %v662_v20 = vsel %vm661_vm8, %v2467_v4, %v658_v13  ;;  %v670_v22 = vmul.f32 %v2469_v15, %v653_v7  ;;  %vm675_vm10 = vweird.f32 %v2469_v15  ;;  %v2445_v4 = vld [vmem:[%s3848_s7 + $0x1] ss:$0 sm:$0xff]  ;;  %v590_v13 = vld [vmem:[%s587_s29] sm:$0x1] }
 0x139   : > { %v667_v21 = vsel %vm664_vm9, %v666_v14, %v662_v20  ;;  %vm676_vm12 = vmor %vm674_vm11, %vm675_vm10  ;;  %vm856_vm15 = vcmp.eq.f32.partialorder %v590_v13, 0.0  ;;  %v2578_v14 = vmov 0  }
 0x13a   : > { %v668_v24 = vmul.f32 %v667_v21, %v650_v17  ;;  %v671_v25 = vsub.f32 1.0, %v670_v22 }
 0x13c   : > { %v3017_v26 = vadd.f32 %v2441_v18, %v668_v24  ;;  %v672_v29 = vmul.f32 %v2469_v15, %v671_v25 }
 0x13e   : > { %725 = vmatmul.f32.vlgmr.msra.gmra.mxu0 %v3017_v26  ;;  %768 = vmatmul.f32.vlgmr.msra.gmra.mxu1 %v3017_v26  ;;  %v673_v31 = vadd.f32 %v2469_v15, %v672_v29 }
 0x13f   : > { %811 = vmatmul.f32.vlgmr.msra.gmra.mxu2 %v3017_v26  ;;  %1280 = vmatpush.msra.mxu1 %v2278_v28 }
 0x140   : > { %v677_v35 = vsel %vm676_vm12, %v2469_v15, %v673_v31  ;;  %v857_v15 = vsel %vm856_vm15, 1, %v2578_v14 }
 0x141   : > { %1281 = vmatpush.msra.mxu1 %v2277_v30  ;;  %v682_v36 = vsel %vm679_vm13, %v681_v32, %v677_v35  ;;  %v858_v17 = vperm.slane %v857_v15, 0 }
 0x142   : > { %v683_v38 = vmul.f32 %v682_v36, %v651_v34 }
 0x143   : > { %1282 = vmatpush.msra.mxu1 %v2276_v33  ;;  %vm3107_vm0 = vcmp.eq.s32.totalorder %v858_v17, 1 }
 0x144   : > { %v3035_v39 = vadd.f32 %v2441_v18, %v683_v38  ;;  %v2386_v18 = vld [vmem:[%s3851_s10 + $0x78] sm:$0xff] }
 0x145   : > { %1283 = vmatpush.msra.mxu1 %v2275_v37 }
 0x146   : > { %728 = vmatmul.f32.gmra.mxu0 %v3035_v39  ;;  %771 = vmatmul.f32.gmra.mxu1 %v3035_v39 }
 0x147   : > { %814 = vmatmul.f32.gmra.mxu2 %v3035_v39  ;;  %1284 = vmatpush.msra.mxu1 %v2274_v40  ;;  %v2213_v40 = vld [vmem:[%s3880_s4 + $0xf8] sm:$0xff] }
 0x149   : > { %1285 = vmatpush.msra.mxu1 %v2273_v23  ;;  %v2212_v23 = vld [vmem:[%s3880_s4 + $0xf0] sm:$0xff] }
 0x14b   : > { %1286 = vmatpush.msra.mxu1 %v2272_v41  ;;  %v2211_v41 = vld [vmem:[%s3880_s4 + $0xe8] sm:$0xff] }
 0x14d   : > { %1287 = vmatpush.msra.mxu1 %v2271_v42  ;;  %v2210_v42 = vld [vmem:[%s3880_s4 + $0xe0] sm:$0xff] }
 0x14e   : > { %1027 = vmatmul.f32.vlgmr.msrb.gmra.mxu0 %v3017_v26  ;;  %1072 = vmatmul.f32.vlgmr.msrb.gmra.mxu1 %v3017_v26 }
 0x14f   : > { %1288 = vmatpush.msra.mxu1 %v2270_v43  ;;  %v2209_v43 = vld [vmem:[%s3880_s4 + $0xd8] sm:$0xff] }
 0x151   : > { %1289 = vmatpush.msra.mxu1 %v2269_v44  ;;  %v2208_v44 = vld [vmem:[%s3880_s4 + $0xd0] sm:$0xff] }
 0x153   : > { %1290 = vmatpush.msra.mxu1 %v2268_v45  ;;  %v2207_v45 = vld [vmem:[%s3880_s4 + $0xc8] sm:$0xff] }
 0x155   : > { %1291 = vmatpush.msra.mxu1 %v2267_v46  ;;  %v2206_v46 = vld [vmem:[%s3880_s4 + $0xc0] sm:$0xff] }
 0x156   : > { %1030 = vmatmul.f32.gmra.mxu0 %v3035_v39  ;;  %1075 = vmatmul.f32.gmra.mxu1 %v3035_v39 }
 0x157   : > { %1292 = vmatpush.msra.mxu1 %v2266_v47  ;;  %v2205_v47 = vld [vmem:[%s3880_s4 + $0xb8] sm:$0xff] }
 0x159   : > { %1293 = vmatpush.msra.mxu1 %v2265_v48  ;;  %v2204_v48 = vld [vmem:[%s3880_s4 + $0xb0] sm:$0xff] }
 0x15b   : > { %1294 = vmatpush.msra.mxu1 %v2264_v49  ;;  %v2203_v49 = vld [vmem:[%s3880_s4 + $0xa8] sm:$0xff] }
 0x15d   : > { %1295 = vmatpush.msra.mxu1 %v2263_v50  ;;  %v2202_v50 = vld [vmem:[%s3880_s4 + $0xa0] sm:$0xff] }
 0x15e   : > { %1296 = vmatmul.f32.vlgmr.msra.gmra.mxu1 %v3017_v26 }
 0x166   : > { %1299 = vmatmul.f32.gmra.mxu1 %v3035_v39 }
 0x1bb   : > { %v726_v51 = vpop.f32.mrf.mxu0  ;;  %v769_v52 = vpop.f32.mrf.mxu1 }
 0x1bc   : > { %v770_v59 = vadd.f32 %v2443_v54, %v769_v52  ;;  %v727_v0 = vadd.f32 %v2442_v58, %v726_v51  ;;  %v2201_v51 = vld [vmem:[%s3880_s4 + $0x98] sm:$0xff]  ;;  %v2200_v52 = vld [vmem:[%s3880_s4 + $0x90] sm:$0xff] }
 0x1c2   : > { %v812_v53 = vpop.f32.mrf.mxu2 }
 0x1c3   : > { %v729_v55 = vpop.f32.mrf.mxu0  ;;  %v772_v56 = vpop.f32.mrf.mxu1  ;;  %v813_v3 = vadd.f32 %v2444_v60, %v812_v53  ;;  %v2199_v53 = vld [vmem:[%s3880_s4 + $0x88] sm:$0xff] }
 0x1c4   : > { %v773_v57 = vadd.f32 %v2443_v54, %v772_v56  ;;  %v730_v6 = vadd.f32 %v2442_v58, %v729_v55  ;;  %v2198_v55 = vld [vmem:[%s3880_s4 + $0x80] sm:$0xff] }
 0x1c6   : > { %2192 = vmatpush.xpose.msk.msra.mxu3 %vm818_vm14, %v773_v57 }
 0x1ca   : > { %v815_v61 = vpop.f32.mrf.mxu2  ;;  %2193 = vmatpush.xpose.msk.msra.mxu3 %vm818_vm14, %v770_v59 }
 0x1cb   : > { %v816_v62 = vadd.f32 %v2444_v60, %v815_v61  ;;  %v1028_v63 = vpop.f32.mrf.mxu0  ;;  %v1073_v1 = vpop.f32.mrf.mxu1 }
 0x1cc   : > { %v1029_v10 = vadd.f32 %v2445_v4, %v1028_v63  ;;  %v1074_v12 = vadd.f32 %v2446_v9, %v1073_v1  ;;  %v943_v63 = vld [vmem:[%s3851_s10 + $0x18] sm:$0xff] }
 0x1cd   : > { %2194 = vmatmul.msk.f32.vlgmr.msra.gmra.mxu3 %vm818_vm14, %v727_v0  ;;  %v942_v0 = vld [vmem:[%s3851_s10 + $0x10] sm:$0xff]  ;;  %1247 = vmatpush.msra.mxu0 %v943_v63  ;;  %v2281_v63 = vld [vmem:[%s3847_s6 + $0x108] sm:$0xff] }
 0x1ce   : > { %931 = vmatpush.msrb.mxu3 %v816_v62 }
 0x1cf   : > { %1248 = vmatpush.msra.mxu0 %v942_v0  ;;  %v2280_v0 = vld [vmem:[%s3847_s6 + $0x100] sm:$0xff] }
 0x1d0   : > { %932 = vmatpush.msrb.mxu3 %v813_v3  ;;  %v941_v3 = vld [vmem:[%s3851_s10 + $0x8] sm:$0xff] }
 0x1d1   : > { %1249 = vmatpush.msra.mxu0 %v941_v3 }
 0x1d2   : > { %966 = vmatpush.msra.mxu3 %v2213_v40  ;;  %v2295_v40 = vld [vmem:[%s3847_s6 + $0x178] sm:$0xff] }
 0x1d3   : > { %v1031_v5 = vpop.f32.mrf.mxu0  ;;  %v1076_v8 = vpop.f32.mrf.mxu1 }
 0x1d4   : > { %v1032_v7 = vadd.f32 %v2445_v4, %v1031_v5  ;;  %v1077_v11 = vadd.f32 %v2446_v9, %v1076_v8  ;;  %967 = vmatpush.msra.mxu3 %v2212_v23  ;;  %v2294_v23 = vld [vmem:[%s3847_s6 + $0x170] sm:$0xff] }
 0x1d5   : > { %2195 = vmatmul.msk.f32.gmra.mxu3 %vm818_vm14, %v730_v6 }
 0x1d6   : > { %2249 = vmatpush.xpose.msk.msrb.mxu2 %vm818_vm14, %v1032_v7  ;;  %968 = vmatpush.msra.mxu3 %v2211_v41  ;;  %v2293_v41 = vld [vmem:[%s3847_s6 + $0x168] sm:$0xff] }
 0x1d8   : > { %969 = vmatpush.msra.mxu3 %v2210_v42  ;;  %v2292_v42 = vld [vmem:[%s3847_s6 + $0x160] sm:$0xff] }
 0x1da   : > { %2250 = vmatpush.xpose.msk.msrb.mxu2 %vm818_vm14, %v1029_v10  ;;  %970 = vmatpush.msra.mxu3 %v2209_v43  ;;  %v2291_v43 = vld [vmem:[%s3847_s6 + $0x158] sm:$0xff] }
 0x1dc   : > { %971 = vmatpush.msra.mxu3 %v2208_v44  ;;  %v2290_v44 = vld [vmem:[%s3847_s6 + $0x150] sm:$0xff] }
 0x1de   : > { %1186 = vmatpush.msra.mxu2 %v1077_v11  ;;  %972 = vmatpush.msra.mxu3 %v2207_v45 }
 0x1e0   : > { %1187 = vmatpush.msra.mxu2 %v1074_v12  ;;  %973 = vmatpush.msra.mxu3 %v2206_v46 }
 0x1e2   : > { %974 = vmatpush.msra.mxu3 %v2205_v47 }
 0x1e4   : > { %975 = vmatpush.msra.mxu3 %v2204_v48 }
 0x1e6   : > { %976 = vmatpush.msra.mxu3 %v2203_v49 }
 0x1e8   : > { %977 = vmatpush.msra.mxu3 %v2202_v50 }
 0x1ea   : > { %978 = vmatpush.msra.mxu3 %v2201_v51 }
 0x1ec   : > { %979 = vmatpush.msra.mxu3 %v2200_v52 }
 0x1ee   : > { %980 = vmatpush.msra.mxu3 %v2199_v53 }
 0x1f0   : > { %981 = vmatpush.msra.mxu3 %v2198_v55  ;;  %v2289_v55 = vld [vmem:[%s3847_s6 + $0x148] sm:$0xff] }
 0x250   : > { %v848_v20 = vpop.f32.mrf.mxu3 }
 0x251   : > { %v854_v21 = vmul.f32 0.17677669, %v848_v20 }
 0x253   : > { %v860_v22 = vsel %vm3107_vm0, -1e+09, %v854_v21 }
 0x254   : > { %v863_v24 = vsel %vm862_vm1, %v860_v22, -inf }
 0x255   : > { %864 = vmax.xlane.f32.xlu2 %v863_v24 }
 0x258   : > { %v851_v25 = vpop.f32.mrf.mxu3 }
 0x259   : > { %v855_v27 = vmul.f32 0.17677669, %v851_v25 }
 0x25b   : > { %v861_v28 = vsel %vm3107_vm0, -1e+09, %v855_v27  ;;  %v2448_v27 = vld [vmem:[%s3846_s5 + $0x1] ss:$0 sm:$0xff] }
 0x25c   : > { %v866_v29 = vsel %vm862_vm1, %v861_v28, -inf }
 0x25d   : > { %867 = vmax.xlane.f32.xlu2 %v866_v29 }
 0x2c8   : > { %v865_v19 = vpop.xlane.xlu2 %864 }
 0x2c9   : > { %v869_v30 = vsub.f32 %v860_v22, %v865_v19  ;;  %v940_v22 = vld [vmem:[%s3851_s10] sm:$0xff] }
 0x2ca   : > { %1250 = vmatpush.msra.mxu0 %v940_v22 }
 0x2cb   : > { %v871_v31 = vmul.f32 1.442695, %v869_v30 }
 0x2cd   : > { %2470 = vpow2.f32 %v871_v31 }
 0x2d0   : > { %v868_v32 = vpop.xlane.xlu2 %867 }
 0x2d1   : > { %v870_v33 = vsub.f32 %v861_v28, %v868_v32 }
 0x2d3   : > { %v3117_v34 = vpop.eup %2470  ;;  %v873_v35 = vmul.f32 1.442695, %v870_v33 }
 0x2d4   : > { %v875_v36 = vsel %vm862_vm1, %v3117_v34, 0.0 }
 0x2d5   : > { %2472 = vpow2.f32 %v873_v35  ;;  %876 = vadd.xlane.f32.xlu0 %v875_v36 }
 0x2db   : > { %v3121_v37 = vpop.eup %2472 }
 0x2dc   : > { %v878_v38 = vsel %vm862_vm1, %v3121_v37, 0.0 }
 0x2dd   : > { %879 = vadd.xlane.f32.xlu1 %v878_v38 }
 0x348   : > { %v877_v54 = vpop.xlane.xlu0 %876 }
 0x349   : > { %2474 = vrcp.f32 %v877_v54  ;;  %v892_v60 = vand.u32 2147483648, %v877_v54  ;;  %v890_v62 = vand.u32 2147483647, %v877_v54  ;;  %vm886_vm3 = vweird.f32 %v877_v54 }
 0x34b   : > { %v893_v5 = vor.u32 1.1754944e-38, %v892_v60  ;;  %vm891_vm5 = vcmp.eq.f32.partialorder %v890_v62, 8.507059e+37  ;;  %v2284_v60 = vld [vmem:[%s3847_s6 + $0x120] sm:$0xff]  ;;  %v2282_v62 = vld [vmem:[%s3847_s6 + $0x110] sm:$0xff] }
 0x34f   : > { %v2475_v56 = vpop.eup %2474 }
 0x350   : > { %v882_v57 = vmul.f32 %v2475_v56, %v877_v54  ;;  %v880_v58 = vpop.xlane.xlu1 %879  ;;  %vm887_vm2 = vweird.f32 %v2475_v56 }
 0x351   : > { %2476 = vrcp.f32 %v880_v58  ;;  %vm888_vm4 = vmor %vm886_vm3, %vm887_vm2  ;;  %v907_v11 = vand.u32 2147483648, %v880_v58  ;;  %v905_v13 = vand.u32 2147483647, %v880_v58  ;;  %vm901_vm7 = vweird.f32 %v880_v58 }
 0x352   : > { %v883_v59 = vsub.f32 1.0, %v882_v57  ;;  %v2287_v57 = vld [vmem:[%s3847_s6 + $0x138] sm:$0xff] }
 0x353   : > { %v908_v15 = vor.u32 1.1754944e-38, %v907_v11  ;;  %vm906_vm9 = vcmp.eq.f32.partialorder %v905_v13, 8.507059e+37 }
 0x354   : > { %v884_v61 = vmul.f32 %v2475_v56, %v883_v59  ;;  %v2285_v59 = vld [vmem:[%s3847_s6 + $0x128] sm:$0xff] }
 0x356   : > { %v885_v1 = vadd.f32 %v2475_v56, %v884_v61  ;;  %v2283_v61 = vld [vmem:[%s3847_s6 + $0x118] sm:$0xff] }
 0x357   : > { %v2477_v4 = vpop.eup %2476 }
 0x358   : > { %v897_v6 = vmul.f32 %v2477_v4, %v880_v58  ;;  %v889_v7 = vsel %vm888_vm4, %v2475_v56, %v885_v1  ;;  %vm902_vm6 = vweird.f32 %v2477_v4  ;;  %v2288_v56 = vld [vmem:[%s3847_s6 + $0x140] sm:$0xff]  ;;  %v2286_v58 = vld [vmem:[%s3847_s6 + $0x130] sm:$0xff] }
 0x359   : > { %v894_v8 = vsel %vm891_vm5, %v893_v5, %v889_v7  ;;  %vm903_vm8 = vmor %vm901_vm7, %vm902_vm6 }
 0x35a   : > { %v898_v9 = vsub.f32 1.0, %v897_v6  ;;  %v895_v10 = vmul.f32 %v3117_v34, %v894_v8 }
 0x35c   : > { %v899_v12 = vmul.f32 %v2477_v4, %v898_v9  ;;  %2196 = vmatmul.msk.f32.vlgmr.msrb.gmra.mxu3 %vm862_vm1, %v895_v10 }
 0x35e   : > { %v900_v14 = vadd.f32 %v2477_v4, %v899_v12 }
 0x360   : > { %v904_v17 = vsel %vm903_vm8, %v2477_v4, %v900_v14 }
 0x361   : > { %v909_v20 = vsel %vm906_vm9, %v908_v15, %v904_v17 }
 0x362   : > { %v910_v21 = vmul.f32 %v3121_v37, %v909_v20 }
 0x364   : > { %2197 = vmatmul.msk.f32.gmra.mxu3 %vm862_vm1, %v910_v21  ;;  %v2341_v21 = vld [vmem:[%s3880_s4 + $0x1f8] sm:$0xff] }
 0x36c   : > { %982 = vmatmul.f32.vlgmr.msra.gmra.mxu3 %v3017_v26 }
 0x374   : > { %985 = vmatmul.f32.gmra.mxu3 %v3035_v39 }
 0x3df   : > { %v934_v24 = vpop.f32.mrf.mxu3 }
 0x3e0   : > { %2261 = vmatmul.msk.f32.vlgmr.msra.gmra.mxu0 %vm818_vm14, %v934_v24 }
 0x3e7   : > { %v937_v25 = vpop.f32.mrf.mxu3 }
 0x3e8   : > { %2262 = vmatmul.msk.f32.gmra.mxu0 %vm818_vm14, %v937_v25  ;;  %v2340_v25 = vld [vmem:[%s3880_s4 + $0x1f0] sm:$0xff] }
 0x3ef   : > { %v983_v28 = vpop.f32.mrf.mxu3 }
 0x3f0   : > { %v984_v29 = vadd.f32 %v2448_v27, %v983_v28  ;;  %v2339_v28 = vld [vmem:[%s3880_s4 + $0x1e8] sm:$0xff] }
 0x3f2   : > { %2251 = vmatmul.msk.f32.vlgmr.msrb.gmra.mxu2 %vm818_vm14, %v984_v29 }
 0x3f3   : > { %1325 = vmatpush.msrb.mxu2 %v2295_v40  ;;  %v2256_v40 = vld [vmem:[%s3851_s10 + $0x28] sm:$0xff] }
 0x3f5   : > { %1326 = vmatpush.msrb.mxu2 %v2294_v23  ;;  %v2334_v23 = vld [vmem:[%s3880_s4 + $0x1c0] sm:$0xff] }
 0x3f7   : > { %v986_v19 = vpop.f32.mrf.mxu3  ;;  %1327 = vmatpush.msrb.mxu2 %v2293_v41  ;;  %v2255_v41 = vld [vmem:[%s3851_s10 + $0x20] sm:$0xff] }
 0x3f8   : > { %v987_v30 = vadd.f32 %v2448_v27, %v986_v19 }
 0x3f9   : > { %1328 = vmatpush.msrb.mxu2 %v2292_v42  ;;  %v2312_v42 = vld [vmem:[%s3849_s8 + $0x178] sm:$0xff] }
 0x3fa   : > { %2252 = vmatmul.msk.f32.gmra.mxu2 %vm818_vm14, %v987_v30  ;;  %v2338_v30 = vld [vmem:[%s3880_s4 + $0x1e0] sm:$0xff] }
 0x3fb   : > { %1329 = vmatpush.msrb.mxu2 %v2291_v43  ;;  %v2333_v43 = vld [vmem:[%s3880_s4 + $0x1b8] sm:$0xff] }
 0x3fd   : > { %1330 = vmatpush.msrb.mxu2 %v2290_v44  ;;  %v2311_v44 = vld [vmem:[%s3849_s8 + $0x170] sm:$0xff] }
 0x3ff   : > { %1331 = vmatpush.msrb.mxu2 %v2289_v55  ;;  %v2327_v55 = vld [vmem:[%s3880_s4 + $0x188] sm:$0xff] }
 0x401   : > { %1332 = vmatpush.msrb.mxu2 %v2288_v56  ;;  %v2305_v56 = vld [vmem:[%s3849_s8 + $0x140] sm:$0xff] }
 0x403   : > { %1333 = vmatpush.msrb.mxu2 %v2287_v57  ;;  %v2326_v57 = vld [vmem:[%s3880_s4 + $0x180] sm:$0xff] }
 0x405   : > { %1334 = vmatpush.msrb.mxu2 %v2286_v58  ;;  %v2304_v58 = vld [vmem:[%s3849_s8 + $0x138] sm:$0xff] }
 0x407   : > { %1335 = vmatpush.msrb.mxu2 %v2285_v59  ;;  %v2303_v59 = vld [vmem:[%s3849_s8 + $0x130] sm:$0xff] }
 0x409   : > { %1336 = vmatpush.msrb.mxu2 %v2284_v60  ;;  %v2302_v60 = vld [vmem:[%s3849_s8 + $0x128] sm:$0xff] }
 0x40b   : > { %1337 = vmatpush.msrb.mxu2 %v2283_v61  ;;  %v2301_v61 = vld [vmem:[%s3849_s8 + $0x120] sm:$0xff] }
 0x40d   : > { %1338 = vmatpush.msrb.mxu2 %v2282_v62  ;;  %v2300_v62 = vld [vmem:[%s3849_s8 + $0x118] sm:$0xff] }
 0x40f   : > { %1339 = vmatpush.msrb.mxu2 %v2281_v63  ;;  %v2299_v63 = vld [vmem:[%s3849_s8 + $0x110] sm:$0xff] }
 0x411   : > { %1340 = vmatpush.msrb.mxu2 %v2280_v0  ;;  %v2298_v0 = vld [vmem:[%s3849_s8 + $0x108] sm:$0xff] }
 0x475   : > { %v1108_v31 = vpop.f32.mrf.mxu2 }
 0x476   : > { %v1114_v32 = vmul.f32 0.17677669, %v1108_v31 }
 0x478   : > { %v1116_v33 = vsel %vm3107_vm0, -1e+09, %v1114_v32 }
 0x479   : > { %v1118_v34 = vsel %vm862_vm1, %v1116_v33, -inf }
 0x47a   : > { %1119 = vmax.xlane.f32.xlu2 %v1118_v34  ;;  %v2337_v34 = vld [vmem:[%s3880_s4 + $0x1d8] sm:$0xff] }
 0x47d   : > { %v1111_v35 = vpop.f32.mrf.mxu2 }
 0x47e   : > { %v1115_v36 = vmul.f32 0.17677669, %v1111_v35  ;;  %v2336_v35 = vld [vmem:[%s3880_s4 + $0x1d0] sm:$0xff] }
 0x480   : > { %v1117_v37 = vsel %vm3107_vm0, -1e+09, %v1115_v36  ;;  %v2258_v36 = vld [vmem:[%s3851_s10 + $0x38] sm:$0xff] }
 0x481   : > { %v1121_v38 = vsel %vm862_vm1, %v1117_v37, -inf  ;;  %1218 = vmatpush.msrb.mxu3 %v2258_v36 }
 0x482   : > { %1122 = vmax.xlane.f32.xlu0 %v1121_v38  ;;  %v2335_v38 = vld [vmem:[%s3880_s4 + $0x1c8] sm:$0xff] }
 0x4ed   : > { %v1120_v45 = vpop.xlane.xlu2 %1119 }
 0x4ee   : > { %v1124_v46 = vsub.f32 %v1116_v33, %v1120_v45  ;;  %v2332_v45 = vld [vmem:[%s3880_s4 + $0x1b0] sm:$0xff] }
 0x4f0   : > { %v1126_v47 = vmul.f32 1.442695, %v1124_v46  ;;  %v2310_v46 = vld [vmem:[%s3849_s8 + $0x168] sm:$0xff] }
 0x4f2   : > { %2478 = vpow2.f32 %v1126_v47  ;;  %v2331_v47 = vld [vmem:[%s3880_s4 + $0x1a8] sm:$0xff] }
 0x4f5   : > { %v1123_v48 = vpop.xlane.xlu0 %1122 }
 0x4f6   : > { %v1125_v49 = vsub.f32 %v1117_v37, %v1123_v48  ;;  %v2257_v37 = vld [vmem:[%s3851_s10 + $0x30] sm:$0xff]  ;;  %v2309_v48 = vld [vmem:[%s3849_s8 + $0x160] sm:$0xff] }
 0x4f7   : > { %1219 = vmatpush.msrb.mxu3 %v2257_v37  ;;  %v2323_v37 = vld [vmem:[%s3851_s10 + $0x58] sm:$0xff] }
 0x4f8   : > { %v2479_v50 = vpop.eup %2478  ;;  %v1128_v51 = vmul.f32 1.442695, %v1125_v49  ;;  %v2330_v49 = vld [vmem:[%s3880_s4 + $0x1a0] sm:$0xff]  ;;  %1532 = vmatpush.msrb.mxu1 %v2323_v37 }
 0x4f9   : > { %v1130_v52 = vsel %vm862_vm1, %v2479_v50, 0.0  ;;  %1220 = vmatpush.msrb.mxu3 %v2256_v40  ;;  %v2321_v40 = vld [vmem:[%s3851_s10 + $0x48] sm:$0xff] }
 0x4fa   : > { %2480 = vpow2.f32 %v1128_v51  ;;  %1131 = vadd.xlane.f32.xlu1 %v1130_v52  ;;  %v2329_v51 = vld [vmem:[%s3880_s4 + $0x198] sm:$0xff]  ;;  %v2307_v52 = vld [vmem:[%s3849_s8 + $0x150] sm:$0xff] }
 0x4fb   : > { %1221 = vmatpush.msrb.mxu3 %v2255_v41 }
 0x4fd   : > { %1370 = vmatpush.msra.mxu3 %v2312_v42 }
 0x4ff   : > { %1371 = vmatpush.msra.mxu3 %v2311_v44 }
 0x500   : > { %v3223_v53 = vpop.eup %2480 }
 0x501   : > { %v1133_v54 = vsel %vm862_vm1, %v3223_v53, 0.0  ;;  %1372 = vmatpush.msra.mxu3 %v2310_v46 }
 0x502   : > { %1134 = vadd.xlane.f32.xlu2 %v1133_v54  ;;  %v2306_v54 = vld [vmem:[%s3849_s8 + $0x148] sm:$0xff] }
 0x503   : > { %1373 = vmatpush.msra.mxu3 %v2309_v48 }
 0x56d   : > { %v1132_v1 = vpop.xlane.xlu1 %1131 }
 0x56e   : > { %2482 = vrcp.f32 %v1132_v1  ;;  %v1147_v7 = vand.u32 2147483648, %v1132_v1  ;;  %v1145_v9 = vand.u32 2147483647, %v1132_v1  ;;  %vm1141_vm11 = vweird.f32 %v1132_v1 }
 0x570   : > { %v1148_v12 = vor.u32 1.1754944e-38, %v1147_v7  ;;  %vm1146_vm13 = vcmp.eq.f32.partialorder %v1145_v9, 8.507059e+37  ;;  %v2355_v7 = vld [vmem:[%s3847_s6 + $0x1e0] sm:$0xff] }
 0x574   : > { %v2483_v3 = vpop.eup %2482 }
 0x575   : > { %v1137_v4 = vmul.f32 %v2483_v3, %v1132_v1  ;;  %v1135_v5 = vpop.xlane.xlu2 %1134  ;;  %vm1142_vm10 = vweird.f32 %v2483_v3  ;;  %v2297_v1 = vld [vmem:[%s3849_s8 + $0x100] sm:$0xff] }
 0x576   : > { %2484 = vrcp.f32 %v1135_v5  ;;  %vm1143_vm12 = vmor %vm1141_vm11, %vm1142_vm10  ;;  %v1162_v22 = vand.u32 2147483648, %v1135_v5  ;;  %v1160_v27 = vand.u32 2147483647, %v1135_v5  ;;  %vm1156_vm2 = vweird.f32 %v1135_v5 }
 0x577   : > { %v1138_v6 = vsub.f32 1.0, %v1137_v4 }
 0x578   : > { %v1163_v19 = vor.u32 1.1754944e-38, %v1162_v22  ;;  %vm1161_vm4 = vcmp.eq.f32.partialorder %v1160_v27, 8.507059e+37  ;;  %v2346_v22 = vld [vmem:[%s3847_s6 + $0x198] sm:$0xff]  ;;  %v2345_v27 = vld [vmem:[%s3847_s6 + $0x190] sm:$0xff] }
 0x579   : > { %v1139_v8 = vmul.f32 %v2483_v3, %v1138_v6  ;;  %v2356_v6 = vld [vmem:[%s3847_s6 + $0x1e8] sm:$0xff] }
 0x57b   : > { %v1140_v10 = vadd.f32 %v2483_v3, %v1139_v8  ;;  %v2354_v8 = vld [vmem:[%s3847_s6 + $0x1d8] sm:$0xff] }
 0x57c   : > { %v2485_v11 = vpop.eup %2484 }
 0x57d   : > { %v1144_v13 = vsel %vm1143_vm12, %v2483_v3, %v1140_v10  ;;  %v1152_v14 = vmul.f32 %v2485_v11, %v1135_v5  ;;  %vm1157_vm15 = vweird.f32 %v2485_v11  ;;  %v2358_v3 = vld [vmem:[%s3847_s6 + $0x1f8] sm:$0xff]  ;;  %v2357_v5 = vld [vmem:[%s3847_s6 + $0x1f0] sm:$0xff] }
 0x57e   : > { %v1149_v15 = vsel %vm1146_vm13, %v1148_v12, %v1144_v13  ;;  %vm1158_vm3 = vmor %vm1156_vm2, %vm1157_vm15  ;;  %v2353_v10 = vld [vmem:[%s3847_s6 + $0x1d0] sm:$0xff]  ;;  %v2351_v12 = vld [vmem:[%s3847_s6 + $0x1c0] sm:$0xff] }
 0x57f   : > { %v1153_v17 = vsub.f32 1.0, %v1152_v14  ;;  %v1150_v20 = vmul.f32 %v2479_v50, %v1149_v15  ;;  %v2308_v50 = vld [vmem:[%s3849_s8 + $0x158] sm:$0xff]  ;;  %v2349_v15 = vld [vmem:[%s3847_s6 + $0x1b0] sm:$0xff] }
 0x580   : > { %1374 = vmatpush.msra.mxu3 %v2308_v50  ;;  %v2350_v13 = vld [vmem:[%s3847_s6 + $0x1b8] sm:$0xff] }
 0x581   : > { %v1154_v24 = vmul.f32 %v2485_v11, %v1153_v17  ;;  %2253 = vmatmul.msk.f32.vlgmr.msra.gmra.mxu2 %vm862_vm1, %v1150_v20  ;;  %v2348_v17 = vld [vmem:[%s3847_s6 + $0x1a8] sm:$0xff]  ;;  %v2347_v20 = vld [vmem:[%s3847_s6 + $0x1a0] sm:$0xff] }
 0x582   : > { %1567 = vmatpush.msra.mxu2 %v2341_v21  ;;  %1375 = vmatpush.msra.mxu3 %v2307_v52  ;;  %v2449_v21 = vld [vmem:[%s3848_s7 + $0x2] ss:$0 sm:$0xff] }
 0x583   : > { %v1155_v29 = vadd.f32 %v2485_v11, %v1154_v24 }
 0x584   : > { %1568 = vmatpush.msra.mxu2 %v2340_v25  ;;  %1376 = vmatpush.msra.mxu3 %v2306_v54 }
 0x585   : > { %v1159_v31 = vsel %vm1158_vm3, %v2485_v11, %v1155_v29  ;;  %v2352_v11 = vld [vmem:[%s3847_s6 + $0x1c8] sm:$0xff] }
 0x586   : > { %1569 = vmatpush.msra.mxu2 %v2339_v28  ;;  %v1164_v32 = vsel %vm1161_vm4, %v1163_v19, %v1159_v31  ;;  %1377 = vmatpush.msra.mxu3 %v2305_v56  ;;  %v1297_v28 = vpop.f32.mrf.mxu1  ;;  %v2344_v29 = vld [vmem:[%s3847_s6 + $0x188] sm:$0xff]  ;;  %v2447_v19 = vld [vmem:[%s3846_s5 + $0x2] ss:$0 sm:$0xff] }
 0x587   : > { %v1165_v33 = vmul.f32 %v3223_v53, %v1164_v32  ;;  %v2328_v53 = vld [vmem:[%s3880_s4 + $0x190] sm:$0xff]  ;;  %v2343_v31 = vld [vmem:[%s3847_s6 + $0x180] sm:$0xff]  ;;  %v1298_v32 = vadd.f32 %v2447_v19, %v1297_v28  ;;  %v2361_v28 = vld [vmem:[%s3849_s8 + $0x188] sm:$0xff] }
 0x588   : > { %1570 = vmatpush.msra.mxu2 %v2338_v30  ;;  %1378 = vmatpush.msra.mxu3 %v2304_v58 }
 0x589   : > { %2254 = vmatmul.msk.f32.gmra.mxu2 %vm862_vm1, %v1165_v33 }
 0x58a   : > { %1571 = vmatpush.msra.mxu2 %v2337_v34  ;;  %1379 = vmatpush.msra.mxu3 %v2303_v59 }
 0x58c   : > { %1572 = vmatpush.msra.mxu2 %v2336_v35  ;;  %1380 = vmatpush.msra.mxu3 %v2302_v60  ;;  %v3436_v35 = vpop.f32.mrf.mxu0 }
 0x58e   : > { %1573 = vmatpush.msra.mxu2 %v2335_v38  ;;  %1381 = vmatpush.msra.mxu3 %v2301_v61  ;;  %v1300_v33 = vpop.f32.mrf.mxu1  ;;  %v2322_v38 = vld [vmem:[%s3851_s10 + $0x50] sm:$0xff] }
 0x58f   : > { %v1301_v34 = vadd.f32 %v2447_v19, %v1300_v33  ;;  %1533 = vmatpush.msrb.mxu1 %v2322_v38  ;;  %v2360_v19 = vld [vmem:[%s3849_s8 + $0x180] sm:$0xff] }
 0x590   : > { %1574 = vmatpush.msra.mxu2 %v2334_v23  ;;  %1382 = vmatpush.msra.mxu3 %v2300_v62 }
 0x591   : > { %1341 = vmatmul.f32.vlgmr.msrb.gmra.mxu2 %v3017_v26  ;;  %1534 = vmatpush.msrb.mxu1 %v2321_v40 }
 0x592   : > { %1575 = vmatpush.msra.mxu2 %v2333_v43  ;;  %1383 = vmatpush.msra.mxu3 %v2299_v63  ;;  %v2320_v43 = vld [vmem:[%s3851_s10 + $0x40] sm:$0xff] }
 0x593   : > { %1535 = vmatpush.msrb.mxu1 %v2320_v43 }
 0x594   : > { %1576 = vmatpush.msra.mxu2 %v2332_v45  ;;  %1384 = vmatpush.msra.mxu3 %v2298_v0  ;;  %v1255_v23 = vpop.f32.mrf.mxu0  ;;  %v2451_v45 = vld [vmem:[%s3850_s9 + $0x2] ss:$0 sm:$0xff] }
 0x596   : > { %1577 = vmatpush.msra.mxu2 %v2331_v47  ;;  %1385 = vmatpush.msra.mxu3 %v2297_v1 }
 0x598   : > { %1578 = vmatpush.msra.mxu2 %v2330_v49 }
 0x599   : > { %1344 = vmatmul.f32.gmra.mxu2 %v3035_v39 }
 0x59a   : > { %1579 = vmatpush.msra.mxu2 %v2329_v51 }
 0x59c   : > { %1580 = vmatpush.msra.mxu2 %v2328_v53 }
 0x59e   : > { %1581 = vmatpush.msra.mxu2 %v2327_v55 }
 0x5a0   : > { %1582 = vmatpush.msra.mxu2 %v2326_v57  ;;  %v2452_v57 = vld [vmem:[%s3848_s7 + $0x3] ss:$0 sm:$0xff] }
 0x5a1   : > { %1583 = vmatmul.f32.vlgmr.msra.gmra.mxu2 %v3017_v26 }
 0x5a2   : > { %1819 = vmatpush.msrb.mxu2 %v2386_v18  ;;  %v1940_v18 = vld [vmem:[%s3855_s14 + $0x80] sm:$0xff] }
 0x5a9   : > { %1586 = vmatmul.f32.gmra.mxu2 %v3035_v39 }
 0x604   : > { %v1189_v4 = vpop.f32.mrf.mxu2 }
 0x605   : > { %2259 = vmatmul.msk.f32.vlgmr.msrb.gmra.mxu3 %vm818_vm14, %v1189_v4 }
 0x606   : > { %1612 = vmatpush.msrb.mxu3 %v2358_v3 }
 0x608   : > { %1613 = vmatpush.msrb.mxu3 %v2357_v5 }
 0x60a   : > { %1614 = vmatpush.msrb.mxu3 %v2356_v6 }
 0x60c   : > { %v1192_v9 = vpop.f32.mrf.mxu2  ;;  %1615 = vmatpush.msrb.mxu3 %v2355_v7 }
 0x60d   : > { %2260 = vmatmul.msk.f32.gmra.mxu3 %vm818_vm14, %v1192_v9  ;;  %v2375_v9 = vld [vmem:[%s3849_s8 + $0x1f8] sm:$0xff] }
 0x60e   : > { %1616 = vmatpush.msrb.mxu3 %v2354_v8 }
 0x610   : > { %1617 = vmatpush.msrb.mxu3 %v2353_v10  ;;  %v2374_v10 = vld [vmem:[%s3849_s8 + $0x1f0] sm:$0xff] }
 0x612   : > { %1618 = vmatpush.msrb.mxu3 %v2352_v11  ;;  %v2373_v11 = vld [vmem:[%s3849_s8 + $0x1e8] sm:$0xff] }
 0x614   : > { %v1342_v14 = vpop.f32.mrf.mxu2  ;;  %1619 = vmatpush.msrb.mxu3 %v2351_v12  ;;  %v2372_v12 = vld [vmem:[%s3849_s8 + $0x1e0] sm:$0xff] }
 0x615   : > { %1386 = vmatmul.f32.vlgmr.msra.gmra.mxu3 %v3017_v26  ;;  %v1343_v30 = vadd.f32 %v2449_v21, %v1342_v14  ;;  %v2370_v14 = vld [vmem:[%s3849_s8 + $0x1d0] sm:$0xff] }
 0x616   : > { %1620 = vmatpush.msrb.mxu3 %v2350_v13  ;;  %v2371_v13 = vld [vmem:[%s3849_s8 + $0x1d8] sm:$0xff] }
 0x618   : > { %1621 = vmatpush.msrb.mxu3 %v2349_v15  ;;  %v2369_v15 = vld [vmem:[%s3849_s8 + $0x1c8] sm:$0xff] }
 0x61a   : > { %1622 = vmatpush.msrb.mxu3 %v2348_v17  ;;  %v2368_v17 = vld [vmem:[%s3849_s8 + $0x1c0] sm:$0xff] }
 0x61c   : > { %v1345_v24 = vpop.f32.mrf.mxu2  ;;  %1623 = vmatpush.msrb.mxu3 %v2347_v20  ;;  %v2367_v20 = vld [vmem:[%s3849_s8 + $0x1b8] sm:$0xff] }
 0x61d   : > { %v1346_v25 = vadd.f32 %v2449_v21, %v1345_v24  ;;  %1389 = vmatmul.f32.gmra.mxu3 %v3035_v39  ;;  %v2366_v21 = vld [vmem:[%s3849_s8 + $0x1b0] sm:$0xff]  ;;  %v2364_v24 = vld [vmem:[%s3849_s8 + $0x1a0] sm:$0xff] }
 0x61e   : > { %1624 = vmatpush.msrb.mxu3 %v2346_v22  ;;  %v2365_v22 = vld [vmem:[%s3849_s8 + $0x1a8] sm:$0xff] }
 0x61f   : > { %2314 = vmatpush.xpose.msk.msrb.mxu0 %vm818_vm14, %v1346_v25  ;;  %v2363_v25 = vld [vmem:[%s3849_s8 + $0x198] sm:$0xff] }
 0x620   : > { %1625 = vmatpush.msrb.mxu3 %v2345_v27  ;;  %v2362_v27 = vld [vmem:[%s3849_s8 + $0x190] sm:$0xff] }
 0x622   : > { %1626 = vmatpush.msrb.mxu3 %v2344_v29 }
 0x623   : > { %2315 = vmatpush.xpose.msk.msrb.mxu0 %vm818_vm14, %v1343_v30 }
 0x624   : > { %1627 = vmatpush.msrb.mxu3 %v2343_v31 }
 0x625   : > { %1628 = vmatmul.f32.vlgmr.msrb.gmra.mxu3 %v3017_v26 }
 0x626   : > { %2316 = vmatmul.msk.f32.vlgmr.msrb.gmra.mxu0 %vm818_vm14, %v1298_v32 }
 0x62d   : > { %1631 = vmatmul.f32.gmra.mxu3 %v3035_v39 }
 0x62e   : > { %2317 = vmatmul.msk.f32.gmra.mxu0 %vm818_vm14, %v1301_v34 }
 0x688   : > { %v3438_v36 = vpop.f32.mrf.mxu3 }
 0x690   : > { %v1226_v41 = vpop.f32.mrf.mxu3 }
 0x691   : > { %v3449_v42 = vadd.f32 %v1255_v23, %v1226_v41 }
 0x698   : > { %v1387_v44 = vpop.f32.mrf.mxu3 }
 0x699   : > { %v1388_v48 = vadd.f32 %v2451_v45, %v1387_v44 }
 0x6a0   : > { %v1390_v46 = vpop.f32.mrf.mxu3 }
 0x6a1   : > { %v1391_v47 = vadd.f32 %v2451_v45, %v1390_v46 }
 0x6a3   : > { %v1422_v49 = vpop.f32.mrf.mxu0  ;;  %1500 = vmatpush.msra.mxu0 %v1391_v47 }
 0x6a4   : > { %v1428_v50 = vmul.f32 0.17677669, %v1422_v49 }
 0x6a5   : > { %1501 = vmatpush.msra.mxu0 %v1388_v48 }
 0x6a6   : > { %v1430_v51 = vsel %vm3107_vm0, -1e+09, %v1428_v50 }
 0x6a7   : > { %v1432_v52 = vsel %vm862_vm1, %v1430_v51, -inf  ;;  %1657 = vmatpush.msrb.mxu0 %v2375_v9 }
 0x6a8   : > { %1433 = vmax.xlane.f32.xlu0 %v1432_v52  ;;  %v1629_v53 = vpop.f32.mrf.mxu3 }
 0x6a9   : > { %v1630_v61 = vadd.f32 %v2452_v57, %v1629_v53  ;;  %1658 = vmatpush.msrb.mxu0 %v2374_v10 }
 0x6ab   : > { %v1425_v54 = vpop.f32.mrf.mxu0  ;;  %1659 = vmatpush.msrb.mxu0 %v2373_v11 }
 0x6ac   : > { %v1429_v55 = vmul.f32 0.17677669, %v1425_v54 }
 0x6ad   : > { %1660 = vmatpush.msrb.mxu0 %v2372_v12 }
 0x6ae   : > { %v1431_v56 = vsel %vm3107_vm0, -1e+09, %v1429_v55 }
 0x6af   : > { %v1435_v58 = vsel %vm862_vm1, %v1431_v56, -inf  ;;  %1661 = vmatpush.msrb.mxu0 %v2371_v13 }
 0x6b0   : > { %1436 = vmax.xlane.f32.xlu1 %v1435_v58  ;;  %v1632_v59 = vpop.f32.mrf.mxu3  ;;  %v1584_v58 = vpop.f32.mrf.mxu2 }
 0x6b1   : > { %v1633_v60 = vadd.f32 %v2452_v57, %v1632_v59  ;;  %1662 = vmatpush.msrb.mxu0 %v2370_v14  ;;  %v2450_v59 = vld [vmem:[%s3846_s5 + $0x3] ss:$0 sm:$0xff] }
 0x6b3   : > { %2377 = vmatpush.xpose.msk.msra.mxu1 %vm818_vm14, %v1633_v60  ;;  %1663 = vmatpush.msrb.mxu0 %v2369_v15  ;;  %v1585_v60 = vadd.f32 %v2450_v59, %v1584_v58 }
 0x6b5   : > { %1664 = vmatpush.msrb.mxu0 %v2368_v17 }
 0x6b7   : > { %2378 = vmatpush.xpose.msk.msra.mxu1 %vm818_vm14, %v1630_v61  ;;  %1665 = vmatpush.msrb.mxu0 %v2367_v20 }
 0x6b9   : > { %1666 = vmatpush.msrb.mxu0 %v2366_v21 }
 0x6bb   : > { %1667 = vmatpush.msrb.mxu0 %v2365_v22 }
 0x6bd   : > { %1668 = vmatpush.msrb.mxu0 %v2364_v24 }
 0x6bf   : > { %1669 = vmatpush.msrb.mxu0 %v2363_v25 }
 0x6c1   : > { %1670 = vmatpush.msrb.mxu0 %v2362_v27 }
 0x6c3   : > { %1671 = vmatpush.msrb.mxu0 %v2361_v28  ;;  %v2385_v28 = vld [vmem:[%s3851_s10 + $0x70] sm:$0xff] }
 0x6c4   : > { %1820 = vmatpush.msrb.mxu2 %v2385_v28  ;;  %v1941_v28 = vld [vmem:[%s3855_s14 + $0x88] sm:$0xff] }
 0x6c5   : > { %1672 = vmatpush.msrb.mxu0 %v2360_v19 }
 0x71b   : > { %v1434_v62 = vpop.xlane.xlu0 %1433 }
 0x71c   : > { %v1438_v63 = vsub.f32 %v1430_v51, %v1434_v62  ;;  %v1587_v62 = vpop.f32.mrf.mxu2 }
 0x71e   : > { %v1440_v0 = vmul.f32 1.442695, %v1438_v63  ;;  %v1588_v63 = vadd.f32 %v2450_v59, %v1587_v62  ;;  %v2454_v59 = vld [vmem:[%s3852_s11] ss:$0 sm:$0xff] }
 0x720   : > { %2486 = vpow2.f32 %v1440_v0 }
 0x723   : > { %v1437_v1 = vpop.xlane.xlu1 %1436 }
 0x724   : > { %v1439_v3 = vsub.f32 %v1431_v56, %v1437_v1 }
 0x726   : > { %v2487_v4 = vpop.eup %2486  ;;  %v1442_v5 = vmul.f32 1.442695, %v1439_v3  ;;  %v1253_v3 = vadd.f32 %v3436_v35, %v3438_v36 }
 0x727   : > { %v1444_v6 = vsel %vm862_vm1, %v2487_v4, 0.0 }
 0x728   : > { %2488 = vpow2.f32 %v1442_v5  ;;  %1445 = vadd.xlane.f32.xlu2 %v1444_v6 }
 0x72e   : > { %v3469_v7 = vpop.eup %2488 }
 0x72f   : > { %v1447_v8 = vsel %vm862_vm1, %v3469_v7, 0.0 }
 0x730   : > { %1448 = vadd.xlane.f32.xlu0 %v1447_v8 }
 0x79b   : > { %v1446_v29 = vpop.xlane.xlu2 %1445 }
 0x79c   : > { %2490 = vrcp.f32 %v1446_v29  ;;  %v1461_v34 = vand.u32 2147483648, %v1446_v29  ;;  %v1459_v38 = vand.u32 2147483647, %v1446_v29  ;;  %vm1455_vm6 = vweird.f32 %v1446_v29 }
 0x79e   : > { %v1462_v41 = vor.u32 1.1754944e-38, %v1461_v34  ;;  %vm1460_vm8 = vcmp.eq.f32.partialorder %v1459_v38, 8.507059e+37 }
 0x7a2   : > { %v2491_v30 = vpop.eup %2490 }
 0x7a3   : > { %v1451_v31 = vmul.f32 %v2491_v30, %v1446_v29  ;;  %v1449_v32 = vpop.xlane.xlu0 %1448  ;;  %vm1456_vm5 = vweird.f32 %v2491_v30  ;;  %v2384_v29 = vld [vmem:[%s3851_s10 + $0x68] sm:$0xff] }
 0x7a4   : > { %2492 = vrcp.f32 %v1449_v32  ;;  %vm1457_vm7 = vmor %vm1455_vm6, %vm1456_vm5  ;;  %v1476_v48 = vand.u32 2147483648, %v1449_v32  ;;  %v1474_v50 = vand.u32 2147483647, %v1449_v32  ;;  %vm1470_vm10 = vweird.f32 %v1449_v32  ;;  %1821 = vmatpush.msrb.mxu2 %v2384_v29  ;;  %v1938_v29 = vld [vmem:[%s3855_s14 + $0x70] sm:$0xff] }
 0x7a5   : > { %v1452_v33 = vsub.f32 1.0, %v1451_v31 }
 0x7a6   : > { %v1477_v52 = vor.u32 1.1754944e-38, %v1476_v48  ;;  %vm1475_vm12 = vcmp.eq.f32.partialorder %v1474_v50, 8.507059e+37 }
 0x7a7   : > { %v1453_v37 = vmul.f32 %v2491_v30, %v1452_v33 }
 0x7a9   : > { %v1454_v40 = vadd.f32 %v2491_v30, %v1453_v37 }
 0x7aa   : > { %v2493_v23 = vpop.eup %2492 }
 0x7ab   : > { %v1458_v43 = vsel %vm1457_vm7, %v2491_v30, %v1454_v40  ;;  %v1466_v44 = vmul.f32 %v2493_v23, %v1449_v32  ;;  %vm1471_vm9 = vweird.f32 %v2493_v23 }
 0x7ac   : > { %v1463_v45 = vsel %vm1460_vm8, %v1462_v41, %v1458_v43  ;;  %vm1472_vm11 = vmor %vm1470_vm10, %vm1471_vm9 }
 0x7ad   : > { %v1467_v46 = vsub.f32 1.0, %v1466_v44  ;;  %v1464_v47 = vmul.f32 %v2487_v4, %v1463_v45 }
 0x7af   : > { %v1468_v49 = vmul.f32 %v2493_v23, %v1467_v46  ;;  %2318 = vmatmul.msk.f32.vlgmr.msra.gmra.mxu0 %vm862_vm1, %v1464_v47 }
 0x7b1   : > { %v1469_v51 = vadd.f32 %v2493_v23, %v1468_v49 }
 0x7b3   : > { %v1473_v53 = vsel %vm1472_vm11, %v2493_v23, %v1469_v51 }
 0x7b4   : > { %v1478_v54 = vsel %vm1475_vm12, %v1477_v52, %v1473_v53 }
 0x7b5   : > { %v1479_v55 = vmul.f32 %v3469_v7, %v1478_v54 }
 0x7b7   : > { %2319 = vmatmul.msk.f32.gmra.mxu0 %vm862_vm1, %v1479_v55 }
 0x7bf   : > { %1673 = vmatmul.f32.vlgmr.msrb.gmra.mxu0 %v3017_v26  ;;  %v2453_v26 = vld [vmem:[%s3850_s9 + $0x3] ss:$0 sm:$0xff] }
 0x7c7   : > { %1676 = vmatmul.f32.gmra.mxu0 %v3035_v39 }
 0x82c   : > { %v1503_v56 = vpop.f32.mrf.mxu0 }
 0x82d   : > { %2324 = vmatmul.msk.f32.vlgmr.msrb.gmra.mxu1 %vm818_vm14, %v1503_v56  ;;  %v2383_v56 = vld [vmem:[%s3851_s10 + $0x60] sm:$0xff] }
 0x82e   : > { %1822 = vmatpush.msrb.mxu2 %v2383_v56 }
 0x834   : > { %v1506_v57 = vpop.f32.mrf.mxu0 }
 0x835   : > { %2325 = vmatmul.msk.f32.gmra.mxu1 %vm818_vm14, %v1506_v57 }
 0x83c   : > { %v1674_v61 = vpop.f32.mrf.mxu0 }
 0x83d   : > { %2379 = vmatmul.msk.f32.vlgmr.msra.gmra.mxu1 %vm818_vm14, %v1585_v60  ;;  %v1675_v1 = vadd.f32 %v2453_v26, %v1674_v61 }
 0x844   : > { %v1677_v39 = vpop.f32.mrf.mxu0 }
 0x845   : > { %v1678_v0 = vadd.f32 %v2453_v26, %v1677_v39  ;;  %2380 = vmatmul.msk.f32.gmra.mxu1 %vm818_vm14, %v1588_v63  ;;  %v2510_v63 = vld [vmem:[%s2732_s21] sm:$0xff] }
 0x847   : > { %1787 = vmatpush.msrb.mxu1 %v1678_v0 }
 0x849   : > { %1788 = vmatpush.msrb.mxu1 %v1675_v1 }
 0x8aa   : > { %v1537_v4 = vpop.f32.mrf.mxu1 }
 0x8ab   : > { %v3538_v5 = vadd.f32 %v1537_v4, %v1253_v3  ;;  %v2511_v3 = vld [vmem:[%s2732_s21 + $0x8] sm:$0xff]  ;;  %s2113_s21 = sshll.u32 %s2110_s30, 4  ;;  %s2114_s21 = int_to_ptr.hbm [resolvable:$true] %s2113_s21 }
 0x8ac   : > { %s2526_s20 = sshra.s32 %s2114_s21, 4  ;;  %s2527_s20 = int_to_ptr.hbm [resolvable:$true] %s2526_s20 }
 0x8ad   : > { %s2528_s29 = scalar_lea.hbm %s2527_s20, 16  ;;  %p2533_p0 = scmp.lt.s32.totalorder %s2527_s20, %s3859_s18 }
 0x8ae   : > { %p2529_p11 = scmp.ne.s32.totalorder %s2527_s20, %s2528_s29  ;;  %p2534_p1 = scmp.lt.s32.totalorder %s2532_s23, %s2528_s29 }
 0x8b0   : > { %p2530_p12 = pnand %p2529_p11, %p2714_p5  ;;  %p2535_p2 = por %p2534_p1, %p2533_p0 }
 0x8b2   : > { %v1540_v6 = vpop.f32.mrf.mxu1  ;;  %p2531_p13 = pneg %p2530_p12 }
 0x8b3   : > { %v3541_v7 = vadd.f32 %v1540_v6, %v3449_v42 }
 0x8b4   : > { %p2536_p3 = pnand %p2535_p2, %p2531_p13 }
 0x8ba   : > { %v1709_v8 = vpop.f32.mrf.mxu1 }
 0x8bb   : > { %v1715_v9 = vmul.f32 0.17677669, %v1709_v8 }
 0x8bd   : > { %v1717_v10 = vsel %vm3107_vm0, -1e+09, %v1715_v9 }
 0x8be   : > { %v1719_v11 = vsel %vm862_vm1, %v1717_v10, -inf }
 0x8bf   : > { %1720 = vmax.xlane.f32.xlu1 %v1719_v11 }
 0x8c2   : > { %v1712_v12 = vpop.f32.mrf.mxu1 }
 0x8c3   : > { %v1716_v13 = vmul.f32 0.17677669, %v1712_v12 }
 0x8c5   : > { %v1718_v35 = vsel %vm3107_vm0, -1e+09, %v1716_v13  ;;  %v1954_v13 = vld [vmem:[%s3855_s14 + $0xf0] sm:$0xff] }
 0x8c6   : > { %v1722_v36 = vsel %vm862_vm1, %v1718_v35, -inf  ;;  %1962 = vmatpush.msra.mxu3 %v1954_v13 }
 0x8c7   : > { %1723 = vmax.xlane.f32.xlu2 %v1722_v36  ;;  %v1953_v36 = vld [vmem:[%s3855_s14 + $0xe8] sm:$0xff] }
 0x932   : > { %v1721_v14 = vpop.xlane.xlu1 %1720 }
 0x933   : > { %v1725_v15 = vsub.f32 %v1717_v10, %v1721_v14  ;;  %v1950_v14 = vld [vmem:[%s3855_s14 + $0xd0] sm:$0xff] }
 0x935   : > { %v1727_v42 = vmul.f32 1.442695, %v1725_v15  ;;  %v1951_v15 = vld [vmem:[%s3855_s14 + $0xd8] sm:$0xff] }
 0x937   : > { %2494 = vpow2.f32 %v1727_v42  ;;  %v1948_v42 = vld [vmem:[%s3855_s14 + $0xc0] sm:$0xff] }
 0x93a   : > { %v1724_v17 = vpop.xlane.xlu2 %1723 }
 0x93b   : > { %v1726_v20 = vsub.f32 %v1718_v35, %v1724_v17  ;;  %v1955_v35 = vld [vmem:[%s3855_s14 + $0xf8] sm:$0xff]  ;;  %v1949_v17 = vld [vmem:[%s3855_s14 + $0xc8] sm:$0xff] }
 0x93c   : > { %1985 = vmatpush.msra.mxu0 %v1955_v35  ;;  %v2024_v35 = vld [vmem:[%s3857_s16 + $0x60] sm:$0xff] }
 0x93d   : > { %v2495_v21 = vpop.eup %2494  ;;  %v1729_v22 = vmul.f32 1.442695, %v1726_v20  ;;  %v1946_v20 = vld [vmem:[%s3855_s14 + $0xb0] sm:$0xff] }
 0x93e   : > { %v1731_v24 = vsel %vm862_vm1, %v2495_v21, 0.0  ;;  %1986 = vmatpush.msra.mxu0 %v1953_v36  ;;  %v2039_v36 = vld [vmem:[%s3857_s16 + $0xd8] sm:$0xff] }
 0x93f   : > { %2496 = vpow2.f32 %v1729_v22  ;;  %1732 = vadd.xlane.f32.xlu0 %v1731_v24  ;;  %v1944_v22 = vld [vmem:[%s3855_s14 + $0xa0] sm:$0xff]  ;;  %v1945_v24 = vld [vmem:[%s3855_s14 + $0xa8] sm:$0xff] }
 0x940   : > { %1987 = vmatpush.msra.mxu0 %v1951_v15  ;;  %v2023_v15 = vld [vmem:[%s3857_s16 + $0x58] sm:$0xff] }
 0x942   : > { %1988 = vmatpush.msra.mxu0 %v1949_v17  ;;  %v2038_v17 = vld [vmem:[%s3857_s16 + $0xd0] sm:$0xff] }
 0x945   : > { %v2497_v25 = vpop.eup %2496 }
 0x946   : > { %v1734_v27 = vsel %vm862_vm1, %v2497_v25, 0.0 }
 0x947   : > { %1735 = vadd.xlane.f32.xlu1 %v1734_v27  ;;  %v1943_v27 = vld [vmem:[%s3855_s14 + $0x98] sm:$0xff] }
 0x9b2   : > { %v1733_v19 = vpop.xlane.xlu0 %1732 }
 0x9b3   : > { %2498 = vrcp.f32 %v1733_v19  ;;  %v1748_v34 = vand.u32 2147483648, %v1733_v19  ;;  %v1746_v38 = vand.u32 2147483647, %v1733_v19  ;;  %vm1742_vm13 = vweird.f32 %v1733_v19 }
 0x9b5   : > { %v1749_v41 = vor.u32 1.1754944e-38, %v1748_v34  ;;  %vm1747_vm2 = vcmp.eq.f32.partialorder %v1746_v38, 8.507059e+37  ;;  %v1934_v34 = vld [vmem:[%s3855_s14 + $0x50] sm:$0xff]  ;;  %v1932_v38 = vld [vmem:[%s3855_s14 + $0x40] sm:$0xff] }
 0x9b9   : > { %v2499_v30 = vpop.eup %2498 }
 0x9ba   : > { %v1738_v31 = vmul.f32 %v2499_v30, %v1733_v19  ;;  %v1736_v32 = vpop.xlane.xlu1 %1735  ;;  %vm1743_vm0 = vweird.f32 %v2499_v30  ;;  %v1939_v19 = vld [vmem:[%s3855_s14 + $0x78] sm:$0xff] }
 0x9bb   : > { %2500 = vrcp.f32 %v1736_v32  ;;  %vm1744_vm15 = vmor %vm1742_vm13, %vm1743_vm0  ;;  %v1763_v48 = vand.u32 2147483648, %v1736_v32  ;;  %v1761_v50 = vand.u32 2147483647, %v1736_v32  ;;  %vm1757_vm4 = vweird.f32 %v1736_v32 }
 0x9bc   : > { %v1739_v33 = vsub.f32 1.0, %v1738_v31  ;;  %v1937_v31 = vld [vmem:[%s3855_s14 + $0x68] sm:$0xff] }
 0x9bd   : > { %v1764_v52 = vor.u32 1.1754944e-38, %v1763_v48  ;;  %vm1762_vm6 = vcmp.eq.f32.partialorder %v1761_v50, 8.507059e+37  ;;  %v1926_v48 = vld [vmem:[%s3855_s14 + $0x10] sm:$0xff] }
 0x9be   : > { %v1740_v37 = vmul.f32 %v2499_v30, %v1739_v33 }
 0x9c0   : > { %v1741_v40 = vadd.f32 %v2499_v30, %v1740_v37  ;;  %v1935_v37 = vld [vmem:[%s3855_s14 + $0x58] sm:$0xff] }
 0x9c1   : > { %v2501_v23 = vpop.eup %2500 }
 0x9c2   : > { %v1745_v43 = vsel %vm1744_vm15, %v2499_v30, %v1741_v40  ;;  %v1753_v44 = vmul.f32 %v2501_v23, %v1736_v32  ;;  %vm1758_vm3 = vweird.f32 %v2501_v23  ;;  %v1936_v30 = vld [vmem:[%s3855_s14 + $0x60] sm:$0xff]  ;;  %v1933_v40 = vld [vmem:[%s3855_s14 + $0x48] sm:$0xff] }
 0x9c3   : > { %v1750_v45 = vsel %vm1747_vm2, %v1749_v41, %v1745_v43  ;;  %vm1759_vm5 = vmor %vm1757_vm4, %vm1758_vm3  ;;  %v1931_v41 = vld [vmem:[%s3855_s14 + $0x38] sm:$0xff]  ;;  %v1928_v43 = vld [vmem:[%s3855_s14 + $0x20] sm:$0xff] }
 0x9c4   : > { %v1754_v46 = vsub.f32 1.0, %v1753_v44  ;;  %v1751_v47 = vmul.f32 %v2495_v21, %v1750_v45  ;;  %v1947_v21 = vld [vmem:[%s3855_s14 + $0xb8] sm:$0xff]  ;;  %v1929_v44 = vld [vmem:[%s3855_s14 + $0x28] sm:$0xff] }
 0x9c5   : > { %1989 = vmatpush.msra.mxu0 %v1947_v21 }
 0x9c6   : > { %v1755_v49 = vmul.f32 %v2501_v23, %v1754_v46  ;;  %2381 = vmatmul.msk.f32.vlgmr.msrb.gmra.mxu1 %vm862_vm1, %v1751_v47 }
 0x9c7   : > { %1990 = vmatpush.msra.mxu0 %v1945_v24 }
 0x9c8   : > { %v1756_v51 = vadd.f32 %v2501_v23, %v1755_v49  ;;  %v1927_v49 = vld [vmem:[%s3855_s14 + $0x18] sm:$0xff] }
 0x9c9   : > { %1991 = vmatpush.msra.mxu0 %v1943_v27  ;;  %v2021_v27 = vld [vmem:[%s3857_s16 + $0x48] sm:$0xff] }
 0x9ca   : > { %v1760_v53 = vsel %vm1759_vm5, %v2501_v23, %v1756_v51  ;;  %v1930_v23 = vld [vmem:[%s3855_s14 + $0x30] sm:$0xff]  ;;  %v1924_v51 = vld [vmem:[%s3855_s14] sm:$0xff] }
 0x9cb   : > { %v1765_v54 = vsel %vm1762_vm6, %v1764_v52, %v1760_v53  ;;  %1992 = vmatpush.msra.mxu0 %v1941_v28  ;;  %v2036_v28 = vld [vmem:[%s3857_s16 + $0xc0] sm:$0xff] }
 0x9cc   : > { %v1766_v55 = vmul.f32 %v2497_v25, %v1765_v54  ;;  %v1942_v25 = vld [vmem:[%s3855_s14 + $0x90] sm:$0xff] }
 0x9cd   : > { %1993 = vmatpush.msra.mxu0 %v1939_v19  ;;  %v2020_v19 = vld [vmem:[%s3857_s16 + $0x40] sm:$0xff] }
 0x9ce   : > { %2382 = vmatmul.msk.f32.gmra.mxu1 %vm862_vm1, %v1766_v55 }
 0x9cf   : > { %1994 = vmatpush.msra.mxu0 %v1937_v31 }
 0x9d1   : > { %1995 = vmatpush.msra.mxu0 %v1935_v37 }
 0x9d3   : > { %1996 = vmatpush.msra.mxu0 %v1933_v40 }
 0x9d5   : > { %1997 = vmatpush.msra.mxu0 %v1931_v41  ;;  %v2018_v41 = vld [vmem:[%s3857_s16 + $0x30] sm:$0xff] }
 0x9d7   : > { %1998 = vmatpush.msra.mxu0 %v1929_v44 }
 0x9d9   : > { %1999 = vmatpush.msra.mxu0 %v1927_v49 }
 0xa43   : > { %v1790_v57 = vpop.f32.mrf.mxu1 }
 0xa44   : > { %2387 = vmatmul.msk.f32.vlgmr.msrb.gmra.mxu2 %vm818_vm14, %v1790_v57 }
 0xa4b   : > { %v1793_v58 = vpop.f32.mrf.mxu1 }
 0xa4c   : > { %2388 = vmatmul.msk.f32.gmra.mxu2 %vm818_vm14, %v1793_v58 }
 0xac7   : > { %v1824_v60 = vpop.f32.mrf.mxu2 }
 0xac8   : > { %v1830_v61 = vadd.f32 %v1824_v60, %v3538_v5 }
 0xaca   : > { %v1836_v62 = vadd.f32 %v2454_v59, %v1830_v61 }
 0xacc   : > { %v3572_v26 = vadd.f32 %v2510_v63, %v1836_v62 }
 0xace   : > { %1842 = vadd.xlane.f32.xlu2 %v3572_v26 }
 0xacf   : > { %v1827_v39 = vpop.f32.mrf.mxu2 }
 0xad0   : > { %v1831_v0 = vadd.f32 %v1827_v39, %v3541_v7  ;;  %v2043_v39 = vld [vmem:[%s3857_s16 + $0xf8] sm:$0xff] }
 0xad1   : > { %2071 = vmatpush.msra.mxu2 %v2043_v39  ;;  %v2029_v39 = vld [vmem:[%s3857_s16 + $0x88] sm:$0xff] }
 0xad2   : > { %v1837_v1 = vadd.f32 %v2454_v59, %v1831_v0  ;;  %v2042_v0 = vld [vmem:[%s3857_s16 + $0xf0] sm:$0xff] }
 0xad3   : > { %2072 = vmatpush.msra.mxu2 %v2042_v0  ;;  %v2015_v0 = vld [vmem:[%s3857_s16 + $0x18] sm:$0xff] }
 0xad4   : > { %v3577_v4 = vadd.f32 %v2511_v3, %v1837_v1 }
 0xad6   : > { %1844 = vadd.xlane.f32.xlu0 %v3577_v4 }
 0xb41   : > { %v1843_v6 = vpop.xlane.xlu2 %1842 }
 0xb42   : > { %v1846_v8 = vmul.f32 %v1843_v6, %v2760_v16  ;;  %v2027_v6 = vld [vmem:[%s3857_s16 + $0x78] sm:$0xff] }
 0xb43   : > { %2048 = vmatpush.msra.mxu1 %v2027_v6  ;;  %v2013_v6 = vld [vmem:[%s3857_s16 + $0x8] sm:$0xff] }
 0xb44   : > { %v3582_v5 = vsub.f32 %v3572_v26, %v1846_v8  ;;  %v2026_v8 = vld [vmem:[%s3857_s16 + $0x70] sm:$0xff] }
 0xb45   : > { %2049 = vmatpush.msra.mxu1 %v2026_v8  ;;  %v2012_v8 = vld [vmem:[%s3857_s16] sm:$0xff] }
 0xb46   : > { %v1850_v9 = vmul.f32 %v3582_v5, %v3582_v5 }
 0xb48   : > { %1852 = vadd.xlane.f32.xlu1 %v1850_v9  ;;  %v2041_v9 = vld [vmem:[%s3857_s16 + $0xe8] sm:$0xff] }
 0xb49   : > { %v1845_v10 = vpop.xlane.xlu0 %1844  ;;  %2073 = vmatpush.msra.mxu2 %v2041_v9  ;;  %v1956_v9 = vld [vmem:[%s3856_s15] sm:$0x3] }
 0xb4a   : > { %v1847_v11 = vmul.f32 %v1845_v10, %v2760_v16  ;;  %v1952_v16 = vld [vmem:[%s3855_s14 + $0xe0] sm:$0xff] }
 0xb4b   : > { %1963 = vmatpush.msra.mxu3 %v1952_v16 }
 0xb4c   : > { %v3588_v7 = vsub.f32 %v3577_v4, %v1847_v11  ;;  %v2025_v11 = vld [vmem:[%s3857_s16 + $0x68] sm:$0xff] }
 0xb4d   : > { %1964 = vmatpush.msra.mxu3 %v1950_v14  ;;  %2050 = vmatpush.msra.mxu1 %v2025_v11 }
 0xb4e   : > { %v1851_v12 = vmul.f32 %v3588_v7, %v3588_v7 }
 0xb4f   : > { %1965 = vmatpush.msra.mxu3 %v1948_v42  ;;  %2051 = vmatpush.msra.mxu1 %v2024_v35  ;;  %v1958_v35 = vperm.slane %v1956_v9, 0 }
 0xb50   : > { %1854 = vadd.xlane.f32.xlu2 %v1851_v12  ;;  %v2040_v12 = vld [vmem:[%s3857_s16 + $0xe0] sm:$0xff] }
 0xb51   : > { %1966 = vmatpush.msra.mxu3 %v1946_v20  ;;  %2074 = vmatpush.msra.mxu2 %v2040_v12 }
 0xb52   : > { %2052 = vmatpush.msra.mxu1 %v2023_v15 }
 0xb53   : > { %1967 = vmatpush.msra.mxu3 %v1944_v22  ;;  %2075 = vmatpush.msra.mxu2 %v2039_v36  ;;  %v2022_v22 = vld [vmem:[%s3857_s16 + $0x50] sm:$0xff] }
 0xb54   : > { %2053 = vmatpush.msra.mxu1 %v2022_v22 }
 0xb55   : > { %1968 = vmatpush.msra.mxu3 %v1942_v25  ;;  %v2037_v25 = vld [vmem:[%s3857_s16 + $0xc8] sm:$0xff]  ;;  %2076 = vmatpush.msra.mxu2 %v2038_v17 }
 0xb56   : > { %2054 = vmatpush.msra.mxu1 %v2021_v27 }
 0xb57   : > { %1969 = vmatpush.msra.mxu3 %v1940_v18  ;;  %2077 = vmatpush.msra.mxu2 %v2037_v25 }
 0xb58   : > { %2055 = vmatpush.msra.mxu1 %v2020_v19 }
 0xb59   : > { %1970 = vmatpush.msra.mxu3 %v1938_v29  ;;  %2078 = vmatpush.msra.mxu2 %v2036_v28 }
 0xb5b   : > { %1971 = vmatpush.msra.mxu3 %v1936_v30  ;;  %v2455_v30 = vld [vmem:[%s3853_s12] ss:$0 sm:$0xff] }
 0xb5d   : > { %1972 = vmatpush.msra.mxu3 %v1934_v34  ;;  %v2019_v34 = vld [vmem:[%s3857_s16 + $0x38] sm:$0xff] }
 0xb5e   : > { %2056 = vmatpush.msra.mxu1 %v2019_v34 }
 0xb5f   : > { %1973 = vmatpush.msra.mxu3 %v1932_v38  ;;  %v2034_v38 = vld [vmem:[%s3857_s16 + $0xb0] sm:$0xff] }
 0xb60   : > { %2057 = vmatpush.msra.mxu1 %v2018_v41 }
 0xb61   : > { %1974 = vmatpush.msra.mxu3 %v1930_v23 }
 0xb63   : > { %1975 = vmatpush.msra.mxu3 %v1928_v43  ;;  %v1885_v43 = vmul.f32 %v2455_v30, %v3582_v5  ;;  %v2032_v5 = vld [vmem:[%s3857_s16 + $0xa0] sm:$0xff] }
 0xb65   : > { %1976 = vmatpush.msra.mxu3 %v1926_v48 }
 0xb67   : > { %1977 = vmatpush.msra.mxu3 %v1924_v51 }
 0xbbb   : > { %v1853_v32 = vpop.xlane.xlu1 %1852 }
 0xbbc   : > { %v1856_v33 = vmul.f32 %v1853_v32, %v2877_v2 }
 0xbbe   : > { %2502 = vrsqrt.f32 %v1856_v33  ;;  %vm1865_vm14 = vcmp.eq.f32.partialorder %v1856_v33, inf  ;;  %v1868_v60 = vand.u32 2147483648, %v1856_v33  ;;  %vm1867_vm1 = vcmp.eq.f32.partialorder %v1856_v33, 0.0 }
 0xbc3   : > { %v1855_v45 = vpop.xlane.xlu2 %1854 }
 0xbc4   : > { %v2503_v46 = vpop.eup %2502  ;;  %v1857_v47 = vmul.f32 %v1855_v45, %v2877_v2  ;;  %v1925_v2 = vld [vmem:[%s3855_s14 + $0x8] sm:$0xff]  ;;  %v2456_v45 = vld [vmem:[%s3854_s13] ss:$0 sm:$0xff] }
 0xbc5   : > { %v1859_v50 = vmul.f32 %v2503_v46, %v1856_v33  ;;  %2000 = vmatpush.msra.mxu0 %v1925_v2 }
 0xbc6   : > { %2504 = vrsqrt.f32 %v1857_v47  ;;  %vm1877_vm7 = vcmp.eq.f32.partialorder %v1857_v47, inf  ;;  %v1880_v16 = vand.u32 2147483648, %v1857_v47  ;;  %vm1879_vm8 = vcmp.eq.f32.partialorder %v1857_v47, 0.0 }
 0xbc7   : > { %v1860_v52 = vmul.f32 %v2503_v46, %v1859_v50 }
 0xbc9   : > { %v1861_v53 = vmul.f32 0.5, %v1860_v52 }
 0xbcb   : > { %v1862_v54 = vsub.f32 1.5, %v1861_v53 }
 0xbcc   : > { %v2505_v55 = vpop.eup %2504 }
 0xbcd   : > { %v1863_v56 = vmul.f32 %v2503_v46, %v1862_v54  ;;  %v1871_v57 = vmul.f32 %v2505_v55, %v1857_v47  ;;  %v2031_v54 = vld [vmem:[%s3857_s16 + $0x98] sm:$0xff] }
 0xbcf   : > { %v1864_v58 = vmul.f32 %v1863_v56, %v1856_v33  ;;  %v1872_v59 = vmul.f32 %v2505_v55, %v1871_v57  ;;  %v1886_v57 = vmul.f32 %v2455_v30, %v3588_v7  ;;  %v2016_v7 = vld [vmem:[%s3857_s16 + $0x20] sm:$0xff] }
 0xbd1   : > { %v1866_v61 = vsel %vm1865_vm14, %v1856_v33, %v1864_v58  ;;  %v1873_v62 = vmul.f32 0.5, %v1872_v59  ;;  %v2035_v33 = vld [vmem:[%s3857_s16 + $0xb8] sm:$0xff] }
 0xbd2   : > { %v1869_v63 = vsel %vm1867_vm1, %v1868_v60, %v1866_v61  ;;  %2079 = vmatpush.msra.mxu2 %v2035_v33 }
 0xbd3   : > { %v1874_v1 = vsub.f32 1.5, %v1873_v62  ;;  %v1887_v3 = vadd.f32 1e-06, %v1869_v63  ;;  %v2017_v62 = vld [vmem:[%s3857_s16 + $0x28] sm:$0xff]  ;;  %v2030_v63 = vld [vmem:[%s3857_s16 + $0x90] sm:$0xff] }
 0xbd4   : > { %2080 = vmatpush.msra.mxu2 %v2034_v38  ;;  %2058 = vmatpush.msra.mxu1 %v2017_v62 }
 0xbd5   : > { %v1875_v10 = vmul.f32 %v2505_v55, %v1874_v1  ;;  %2506 = vrcp.f32 %v1887_v3  ;;  %v1900_v29 = vand.u32 2147483648, %v1887_v3  ;;  %v1898_v32 = vand.u32 2147483647, %v1887_v3  ;;  %v2028_v1 = vld [vmem:[%s3857_s16 + $0x80] sm:$0xff] }
 0xbd6   : > { %vm1894_vm10 = vweird.f32 %v1887_v3  ;;  %2059 = vmatpush.msra.mxu1 %v2016_v7 }
 0xbd7   : > { %v1876_v13 = vmul.f32 %v1875_v10, %v1857_v47  ;;  %v1901_v23 = vor.u32 1.1754944e-38, %v1900_v29  ;;  %vm1899_vm12 = vcmp.eq.f32.partialorder %v1898_v32, 8.507059e+37  ;;  %v1959_v10 = vperm.slane %v1956_v9, 1 }
 0xbd8   : > { %2060 = vmatpush.msra.mxu1 %v2015_v0 }
 0xbd9   : > { %v1878_v14 = vsel %vm1877_vm7, %v1857_v47, %v1876_v13  ;;  %v2033_v47 = vld [vmem:[%s3857_s16 + $0xa8] sm:$0xff] }
 0xbda   : > { %v1881_v42 = vsel %vm1879_vm8, %v1880_v16, %v1878_v14  ;;  %2081 = vmatpush.msra.mxu2 %v2033_v47 }
 0xbdb   : > { %v2507_v20 = vpop.eup %2506  ;;  %v3723_v21 = vadd.f32 1e-06, %v1881_v42 }
 0xbdc   : > { %v1890_v24 = vmul.f32 %v2507_v20, %v1887_v3  ;;  %vm1895_vm9 = vweird.f32 %v2507_v20  ;;  %2082 = vmatpush.msra.mxu2 %v2032_v5  ;;  %v2014_v3 = vld [vmem:[%s3857_s16 + $0x10] sm:$0xff] }
 0xbdd   : > { %2508 = vrcp.f32 %v3723_v21  ;;  %vm1896_vm11 = vmor %vm1894_vm10, %vm1895_vm9  ;;  %v1915_v51 = vand.u32 2147483648, %v3723_v21  ;;  %v1913_v53 = vand.u32 2147483647, %v3723_v21  ;;  %vm1909_vm13 = vweird.f32 %v3723_v21  ;;  %2061 = vmatpush.msra.mxu1 %v2014_v3 }
 0xbde   : > { %v1891_v18 = vsub.f32 1.0, %v1890_v24  ;;  %2083 = vmatpush.msra.mxu2 %v2031_v54  ;;  %v2457_v24 = vld [vmem:[%s3858_s17] ss:$0 sm:$0xff] }
 0xbdf   : > { %v1916_v56 = vor.u32 1.1754944e-38, %v1915_v51  ;;  %vm1914_vm2 = vcmp.eq.f32.partialorder %v1913_v53, 8.507059e+37  ;;  %2062 = vmatpush.msra.mxu1 %v2013_v6 }
 0xbe0   : > { %v1892_v31 = vmul.f32 %v2507_v20, %v1891_v18  ;;  %2084 = vmatpush.msra.mxu2 %v2030_v63 }
 0xbe1   : > { %2063 = vmatpush.msra.mxu1 %v2012_v8 }
 0xbe2   : > { %v1893_v37 = vadd.f32 %v2507_v20, %v1892_v31  ;;  %2085 = vmatpush.msra.mxu2 %v2029_v39 }
 0xbe3   : > { %v2509_v40 = vpop.eup %2508 }
 0xbe4   : > { %v1897_v44 = vsel %vm1896_vm11, %v2507_v20, %v1893_v37  ;;  %v1905_v46 = vmul.f32 %v2509_v40, %v3723_v21  ;;  %vm1910_vm0 = vweird.f32 %v2509_v40  ;;  %2086 = vmatpush.msra.mxu2 %v2028_v1 }
 0xbe5   : > { %v1902_v48 = vsel %vm1899_vm12, %v1901_v23, %v1897_v44  ;;  %vm1911_vm15 = vmor %vm1909_vm13, %vm1910_vm0 }
 0xbe6   : > { %v1903_v49 = vmul.f32 %v1902_v48, %v1885_v43  ;;  %v1906_v50 = vsub.f32 1.0, %v1905_v46 }
 0xbe8   : > { %v1922_v2 = vadd.f32 %v2456_v45, %v1903_v49  ;;  %v1907_v52 = vmul.f32 %v2509_v40, %v1906_v50 }
 0xbea   : > { %1978 = vmatmul.f32.vlgmr.msra.gmra.mxu3 %v1922_v2  ;;  %2001 = vmatmul.f32.vlgmr.msra.gmra.mxu0 %v1922_v2  ;;  %v1908_v55 = vadd.f32 %v2509_v40, %v1907_v52 }
 0xbec   : > { %v1912_v58 = vsel %vm1911_vm15, %v2509_v40, %v1908_v55 }
 0xbed   : > { %v1917_v59 = vsel %vm1914_vm2, %v1916_v56, %v1912_v58 }
 0xbee   : > { %v1918_v60 = vmul.f32 %v1917_v59, %v1886_v57 }
 0xbf0   : > { %v1923_v61 = vadd.f32 %v2456_v45, %v1918_v60 }
 0xbf2   : > { %1981 = vmatmul.f32.gmra.mxu3 %v1923_v61  ;;  %2004 = vmatmul.f32.gmra.mxu0 %v1923_v61 }
 0xc67   : > { %v2002_v11 = vpop.f32.mrf.mxu0 }
 0xc68   : > { %v2003_v12 = vadd.f32 %v2002_v11, %v1959_v10 }
 0xc6a   : > { %v2009_v13 = vmax.f32 %v2003_v12, 0.0 }
 0xc6c   : > { %2087 = vmatmul.f32.vlgmr.msra.gmra.mxu2 %v2009_v13 }
 0xc6d   : > { %v1979_v16 = vpop.f32.mrf.mxu3 }
 0xc6e   : > { %v1980_v36 = vadd.f32 %v1979_v16, %v1958_v35 }
 0xc6f   : > { %v2005_v14 = vpop.f32.mrf.mxu0 }
 0xc70   : > { %v2008_v15 = vmax.f32 %v1980_v36, 0.0  ;;  %v2006_v42 = vadd.f32 %v2005_v14, %v1959_v10 }
 0xc72   : > { %v2011_v17 = vmax.f32 %v2006_v42, 0.0  ;;  %2064 = vmatmul.f32.vlgmr.msra.gmra.mxu1 %v2008_v15 }
 0xc74   : > { %2090 = vmatmul.f32.gmra.mxu2 %v2011_v17 }
 0xc75   : > { %v1982_v20 = vpop.f32.mrf.mxu3 }
 0xc76   : > { %v1983_v21 = vadd.f32 %v1982_v20, %v1958_v35 }
 0xc78   : > { %v2010_v22 = vmax.f32 %v1983_v21, 0.0 }
 0xc7a   : > { %2067 = vmatmul.f32.gmra.mxu1 %v2010_v22 }
 0xcef   : > { %v2065_v25 = vpop.f32.mrf.mxu1  ;;  %v2088_v27 = vpop.f32.mrf.mxu2 }
 0xcf0   : > { %v2066_v18 = vadd.f32 %v2457_v24, %v2065_v25 }
 0xcf2   : > { %v2089_v28 = vadd.f32 %v2088_v27, %v2066_v18 }
 0xcf4   : > { %v2094_v29 = vadd.f32 %v2089_v28, %v3572_v26 }
 0xcf6   : > { %2096 = vst [vmem:[%s579_s25] sm:$0xff] %v2094_v29 }
 0xcf7   : > { %v2068_v19 = vpop.f32.mrf.mxu1  ;;  %v2091_v31 = vpop.f32.mrf.mxu2 }
 0xcf8   : > { %v2069_v30 = vadd.f32 %v2457_v24, %v2068_v19 }
 0xcfa   : > { %v2092_v32 = vadd.f32 %v2091_v31, %v2069_v30 }
 0xcfc   : > { %v2095_v33 = vadd.f32 %v2092_v32, %v3577_v4 }
 0xcfe   : > { %2097 = vst [vmem:[%s579_s25 + $0x8] sm:$0xff] %v2095_v33 }
 0xcff   : > { %2539 = shalt.err (!%p2536_p3)
}
 0xd00   : > { %s2579_s1 = smov 128   ;;  %s2580_s25 = smov 8  }
 0xd01   : > { %2396 = dma.vmem_to_hbm [thread:$0]  (%p2714_p5), %s2112_s19, 256, %s2114_s21, %s2099_s0, %s2579_s1, %s2579_s1, %s2580_s25  }
 0xd02 PF: > { %s3886_s30 = sld [smem:[#allocation7_spill]] }
 0xd03   : > { %s3887_s3 = sld [smem:[#allocation5_spill]] }
 0xd08   : > { %p2402_p4 = scmp.ge.s32.totalorder %s3886_s30, 2 }
 0xd09   : > { %s2128_s24 = sand.u32 1, %s3887_s3  }
 0xd0a   : > { %p2399_p7 = pnand %p2402_p4, %p2718_p6  ;;  %s2129_s22 = scalar_lea.sflag [#allocation3], %s2128_s24 }
 0xd0c   : > { %p2400_p8 = pneg %p2399_p7 }
 0xd0e   : > { %2557 = dma.done.wait (%p2400_p8), %s2129_s22, 256  }
 0xd0f   : > { %2559 = vsyncadd (%p2400_p8), %s2129_s22, 4294967040  ;;  %s3889_s30 = sld [smem:[#allocation8_spill]]  ;;  %s3892_s27 = smov %s2566_s28 }
 0xd10   : > { %s3890_s20 = sld [smem:[#allocation6_spill]] }
 0xd11   : > { %s3891_s29 = sld [smem:[#allocation9_spill]] }
 0xd15   : > { %p28_p9 = scmp.ge.s32.totalorder %s3889_s30, 4  }
 0xd16   : > { %s3893_s28 = smov %s3890_s20 }
 0xd17   :  { %30 = sbr.rel (!%p28_p9) target bundleno = 9 (0x9), region = 151 }
 0xd1c   :  { %2135 = vsyncpa [#allocation3], 1 }
 0xd1d   :  { %2137 = vsyncpa [#allocation3 + $0x1], 1 }

</bundles_post_ra>
